<compile_context>
chip_gen: v6e
topology: v6e:2x2x1
jax: 0.10.0
libtpu: 0.0.40
codegen_flags: <defaults>
</compile_context>

<pallas_src>
import functools

import jax
import jax.numpy as jnp
from jax import lax
from jax.experimental import pallas as pl
from jax.experimental.pallas import tpu as pltpu

_LANE = 128
_MASK_FILL = -1e30


def _round_up(v, m):
    return (v + m - 1) // m * m


# ---------------------------------------------------------------------------
# Probe: does jnp.argmax lower inside a Pallas TPU kernel on this toolchain?
# (If not, the kernel falls back to the iota/where/min first-max formulation.)
# ---------------------------------------------------------------------------
def _probe_argmax_kernel(x_ref, o_ref):
    a = jnp.argmax(x_ref[...], axis=-1).astype(jnp.int32)   # (1, 8)
    o_ref[...] = a[:, None, :]                               # (1, 1, 8)


_ARGMAX_SUPPORTED = None


def _lax_argmax_supported():
    global _ARGMAX_SUPPORTED
    if _ARGMAX_SUPPORTED is None:
        try:
            fn = pl.pallas_call(
                _probe_argmax_kernel,
                out_shape=jax.ShapeDtypeStruct((1, 1, 8), jnp.int32))
            jax.jit(fn).lower(
                jax.ShapeDtypeStruct((1, 8, 128), jnp.float32)).compile()
            _ARGMAX_SUPPORTED = True
        except Exception:
            _ARGMAX_SUPPORTED = False
    return _ARGMAX_SUPPORTED


# ---------------------------------------------------------------------------
# Stage 1: fused head/dep MLP.  x:(TM,Dp) @ Whd:(Dp,2Hp) + b, ReLU, -> bf16.
# ---------------------------------------------------------------------------
def _mlp_kernel(x_ref, w_ref, b_ref, hd_ref):
    acc = jnp.dot(x_ref[...], w_ref[...], preferred_element_type=jnp.float32)
    hd_ref[...] = jnp.maximum(acc + b_ref[...], 0.0).astype(hd_ref.dtype)


# ---------------------------------------------------------------------------
# Stage 2: biaffine scores + masked log-softmax + greedy argmax for a
# (Bb, TQ) block of dep rows against all Lp head candidates.
# ---------------------------------------------------------------------------
def _biaffine_kernel(deps_ref, heads_ref, w00_ref, w10_ref, mask_d_ref,
                     mask_h_ref, scores_ref, tag_ref, *, use_lax_argmax):
    bb, tq, hp = deps_ref.shape
    lp = heads_ref.shape[1]

    deps = deps_ref[...]                        # (Bb, TQ, Hp) bf16
    heads = heads_ref[...]                      # (Bb, Lp, Hp) bf16

    # t = deps @ W00 + w10  (head-side bias folded into the MXU operand; the
    # dep-side bias and the scalar bias are constant along the head-candidate
    # axis and cancel under the row-wise log_softmax / argmax, so dropped).
    t = jnp.dot(deps.reshape(bb * tq, hp), w00_ref[...],
                preferred_element_type=jnp.float32)
    t = (t + w10_ref[...]).reshape(bb, tq, hp).astype(jnp.bfloat16)

    # s[b, i, j] = t[b, i, :] . heads[b, j, :]
    s = jnp.einsum('bik,bjk->bij', t, heads,
                   preferred_element_type=jnp.float32)        # (Bb, TQ, Lp)

    dep_ok = mask_d_ref[...] > 0.0              # (Bb, TQ, 1)  bool
    head_ok = mask_h_ref[...] > 0.0             # (Bb, 1, Lp)  bool
    valid = dep_ok & head_ok                    # broadcast AND -> (Bb, TQ, Lp)
    s = jnp.where(valid, s, _MASK_FILL)

    # Row max is shared by the argmax fallback and the softmax shift.
    maxv = jnp.max(s, axis=-1, keepdims=True)

    # Greedy head prediction (first-max index + 1), zeroed on masked dep rows.
    # (Argmax on the raw masked scores is invariant to the log-softmax shift.)
    if use_lax_argmax:
        amax = jnp.argmax(s, axis=-1).astype(jnp.int32)       # (Bb, TQ)
    else:
        idx = lax.broadcasted_iota(jnp.int32, s.shape, 2)
        amax = jnp.min(jnp.where(s == maxv, idx, lp), axis=-1).astype(jnp.int32)
    tag_ref[...] = jnp.where(dep_ok[:, :, 0], amax + 1, 0)[:, None, :]

    # Row-wise log-softmax over head candidates; masked entries -> -inf.
    z = s - maxv
    lse = jnp.log(jnp.sum(jnp.exp(z), axis=-1, keepdims=True))
    scores_ref[...] = jnp.where(valid, z - lse, -jnp.inf)
    # TODO(synk): optional bf16 scores output (halves the dominant HBM write
    # on v7x) if downstream decoding tolerates bf16 log-probs.


@functools.partial(jax.jit, static_argnames=("use_lax_argmax",))
def _forward_impl(x, Wh, bh, Wd, bd, Wb, mask, mask_h, *, use_lax_argmax):
    B, L, D = x.shape
    H = Wh.shape[1]
    f32, bf16 = jnp.float32, jnp.bfloat16

    Dp = _round_up(D, _LANE)
    Hp = _round_up(H, _LANE)
    Lp = _round_up(L, _LANE)

    # ---- Stage 1: fused head/dep MLP over all B*Lp tokens ------------------
    # Pad per-batch BEFORE stage 1 so the output is already (B, Lp, 2Hp)
    # after a free reshape (padded rows are fully masked in stage 2).
    x_p = jnp.pad(x.astype(bf16), ((0, 0), (0, Lp - L), (0, Dp - D)))
    x_flat = x_p.reshape(B * Lp, Dp)

    Whd = jnp.concatenate(
        [jnp.pad(Wh.astype(bf16), ((0, Dp - D), (0, Hp - H))),
         jnp.pad(Wd.astype(bf16), ((0, Dp - D), (0, Hp - H)))], axis=1)
    bhd = jnp.concatenate(
        [jnp.pad(bh.astype(f32), (0, Hp - H)),
         jnp.pad(bd.astype(f32), (0, Hp - H))]).reshape(1, 2 * Hp)

    BLp = B * Lp
    TM = 128
    w_bytes = Dp * 2 * Hp * 2
    for cand in (512, 256):
        if BLp % cand == 0 and \
                2 * cand * (Dp + 2 * Hp) * 2 + 2 * w_bytes <= 12 * 1024 * 1024:
            TM = cand
            break

    hd = pl.pallas_call(
        _mlp_kernel,
        out_shape=jax.ShapeDtypeStruct((BLp, 2 * Hp), bf16),
        grid_spec=pltpu.PrefetchScalarGridSpec(
            num_scalar_prefetch=0,
            grid=(BLp // TM,),
            in_specs=[
                pl.BlockSpec((TM, Dp), lambda r: (r, 0)),        # tokens
                pl.BlockSpec((Dp, 2 * Hp), lambda r: (0, 0)),    # [Wh | Wd]
                pl.BlockSpec((1, 2 * Hp), lambda r: (0, 0)),     # [bh | bd]
            ],
            out_specs=pl.BlockSpec((TM, 2 * Hp), lambda r: (r, 0)),
        ),
        compiler_params=pltpu.CompilerParams(
            dimension_semantics=("parallel",)),
    )(x_flat, Whd, bhd)
    hd3 = hd.reshape(B, Lp, 2 * Hp)          # contiguous -> free reshape

    # ---- Stage 2: biaffine + masked log-softmax + argmax -------------------
    w00 = jnp.pad(Wb[:H, :H].astype(bf16), ((0, Hp - H), (0, Hp - H)))
    w10 = jnp.pad(Wb[H, :H].astype(f32), (0, Hp - H)).reshape(1, Hp)
    # NOTE: Wb[:H, H] (dep-side bias) and Wb[H, H] (scalar bias) cancel under
    # the row-wise log_softmax / argmax and are intentionally dropped.

    mask_d = jnp.pad(mask.astype(f32), ((0, 0), (0, Lp - L)))[:, :, None]
    mask_hp = jnp.pad(mask_h.astype(f32), ((0, 0), (0, Lp - L)))[:, None, :]

    # Row tiling: per-step footprint O(TQ*Lp) instead of O(Lp^2); 2-D fully
    # parallel grid keeps both v7x TensorCores busy even at small batch.
    TQ = 256 if Lp % 256 == 0 else 128

    def _step_bytes(bb):
        return (2 * bb * TQ * Lp * 4       # scores out block (double-buffered)
                + 2 * bb * Lp * Hp * 2     # heads block
                + 2 * bb * TQ * Hp * 2     # deps block
                + 4 * bb * TQ * Lp * 4)    # in-body f32 temporaries

    Bb = 1
    for bb in range(1, B + 1):
        if B % bb == 0 and _step_bytes(bb) <= 10 * 1024 * 1024:
            Bb = bb
    while Bb > 1 and (B // Bb) * (Lp // TQ) < 2:   # keep >= 2 grid steps
        Bb -= 1
        while B % Bb:
            Bb -= 1

    kernel = functools.partial(_biaffine_kernel, use_lax_argmax=use_lax_argmax)
    scores_p, tag_p = pl.pallas_call(
        kernel,
        out_shape=(jax.ShapeDtypeStruct((B, Lp, Lp), f32),
                   jax.ShapeDtypeStruct((B, 1, Lp), jnp.int32)),
        grid_spec=pltpu.PrefetchScalarGridSpec(
            num_scalar_prefetch=0,
            grid=(B // Bb, Lp // TQ),
            in_specs=[
                pl.BlockSpec((Bb, TQ, Hp), lambda g, r: (g, r, 1)),  # deps rows
                pl.BlockSpec((Bb, Lp, Hp), lambda g, r: (g, 0, 0)),  # all heads
                pl.BlockSpec((Hp, Hp), lambda g, r: (0, 0)),         # W00
                pl.BlockSpec((1, Hp), lambda g, r: (0, 0)),          # w10
                pl.BlockSpec((Bb, TQ, 1), lambda g, r: (g, r, 0)),   # dep mask
                pl.BlockSpec((Bb, 1, Lp), lambda g, r: (g, 0, 0)),   # head mask
            ],
            out_specs=[
                pl.BlockSpec((Bb, TQ, Lp), lambda g, r: (g, r, 0)),
                pl.BlockSpec((Bb, 1, TQ), lambda g, r: (g, 0, r)),
            ]),
        compiler_params=pltpu.CompilerParams(
            dimension_semantics=("parallel", "parallel")),
    )(hd3, hd3, w00, w10, mask_d, mask_hp)

    # Padded outputs returned as-is (no full-tensor slice of the f32 scores):
    # valid region is scores[:, :L, :L] / tags[:, :L]; padded rows/cols are
    # -inf / 0 by construction of the masks.
    return scores_p, tag_p[:, 0, :]


def pointer_selector_forward(x, Wh, bh, Wd, bd, Wb, mask, mask_h):
    """Returns (log-softmax scores padded to (B, Lp, Lp) f32,
                greedy head tags padded to (B, Lp) int32)."""
    # TODO(synk): find_best_heap (host-side numpy MST/heap head decoding) has
    # no Pallas equivalent; forward returns the greedy argmax head sequence.
    return _forward_impl(x, Wh, bh, Wd, bd, Wb, mask, mask_h,
                         use_lax_argmax=_lax_argmax_supported())


# ---------------------------------------------------------------------------
# References for verification.
# ---------------------------------------------------------------------------
def _reference_mirrored(x, Wh, bh, Wd, bd, Wb, mask, mask_h):
    """Plain-JAX reference with the same bf16 matmul / f32 accumulate policy."""
    H = Wh.shape[1]
    bf16, f32 = jnp.bfloat16, jnp.float32
    xb = x.astype(bf16)
    heads = jnp.maximum(
        jnp.dot(xb, Wh.astype(bf16), preferred_element_type=f32) + bh, 0.0
    ).astype(bf16)
    deps = jnp.maximum(
        jnp.dot(xb, Wd.astype(bf16), preferred_element_type=f32) + bd, 0.0
    ).astype(bf16)
    t = (jnp.einsum('bik,kh->bih', deps, Wb[:H, :H].astype(bf16),
                    preferred_element_type=f32) + Wb[H, :H]).astype(bf16)
    s = jnp.einsum('bik,bjk->bij', t, heads, preferred_element_type=f32)
    valid = (mask[:, :, None] * mask_h[:, None, :]) > 0
    s = jnp.where(valid, s, _MASK_FILL)
    return jnp.where(valid, jax.nn.log_softmax(s, axis=-1), -jnp.inf)


def _reference_f32(x, Wh, bh, Wd, bd, Wb, mask, mask_h):
    """Full-precision, full-biaffine reference (matches the PyTorch module)."""
    heads = jax.nn.relu(x @ Wh + bh)
    deps = jax.nn.relu(x @ Wd + bd)
    B, L, _ = heads.shape
    ones = jnp.ones((B, L, 1), x.dtype)
    da = jnp.concatenate([deps, ones], -1)
    ha = jnp.concatenate([heads, ones], -1)
    s = jnp.einsum('bip,pq,bjq->bij', da, Wb, ha)
    mask_att = mask[:, :, None] * mask_h[:, None, :]
    s = jnp.where(mask_att > 0, s, -jnp.inf)
    return jax.nn.log_softmax(s, axis=-1)


if __name__ == "__main__":
    B, L, D, H = 2, 8, 32, 32     # batch, seq_len, parser._proj_dims, hidden

    key = jax.random.PRNGKey(0)
    ks = jax.random.split(key, 6)
    x = jax.random.normal(ks[0], (B, L, D), jnp.float32)
    Wh = jax.random.normal(ks[1], (D, H), jnp.float32) * 0.1
    bh = jax.random.normal(ks[2], (H,), jnp.float32) * 0.1
    Wd = jax.random.normal(ks[3], (D, H), jnp.float32) * 0.1
    bd = jax.random.normal(ks[4], (H,), jnp.float32) * 0.1
    Wb = jax.random.normal(ks[5], (H + 1, H + 1), jnp.float32) * 0.1
    mask = jnp.ones((B, L), jnp.float32)      # batch['mask']
    mask_h = jnp.ones((B, L), jnp.float32)    # batch_cand_mask(batch)

    scores_p, tag_p = pointer_selector_forward(x, Wh, bh, Wd, bd, Wb,
                                               mask, mask_h)
    jax.block_until_ready((scores_p, tag_p))

    # Valid region of the padded, lane-dense kernel outputs (test-only slice).
    scores = scores_p[:, :L, :L]
    tag_seq = tag_p[:, :L]

    # 1) Tight check against a reference with the same precision policy.
    ref_scores = _reference_mirrored(x, Wh, bh, Wd, bd, Wb, mask, mask_h)
    assert jnp.allclose(scores, ref_scores, atol=5e-3, rtol=5e-3), \
        "scores mismatch vs mirrored reference"

    # 2) Loose check against the full-precision full-biaffine reference
    #    (validates dropping the softmax-invariant bias terms).
    f32_scores = _reference_f32(x, Wh, bh, Wd, bd, Wb, mask, mask_h)
    assert jnp.allclose(scores, f32_scores, atol=1e-1, rtol=5e-2), \
        "scores mismatch vs f32 reference"

    # 3) Greedy head prediction is consistent with the returned scores.
    exp_tag = (jnp.argmax(scores, axis=-1).astype(jnp.int32) + 1) \
        * mask.astype(jnp.int32)
    assert jnp.array_equal(tag_seq, exp_tag), "tag_seq mismatch"

    print("KERNEL_OK")
</pallas_src>

<mosaic_0001>
module attributes {stable_mosaic.version = 11 : i64} {
  func.func @_biaffine_kernel(%arg0: i32, %arg1: i32, %arg2: memref<1x128x128xbf16, #tpu.memory_space<vmem>>, %arg3: memref<1x128x128xbf16, #tpu.memory_space<vmem>>, %arg4: memref<128x128xbf16, #tpu.memory_space<vmem>>, %arg5: memref<1x128xf32, #tpu.memory_space<vmem>>, %arg6: memref<1x128x1xf32, #tpu.memory_space<vmem>>, %arg7: memref<1x1x128xf32, #tpu.memory_space<vmem>>, %arg8: memref<1x128x128xf32, #tpu.memory_space<vmem>>, %arg9: memref<1x1x128xi32, #tpu.memory_space<vmem>>) attributes {dimension_semantics = [#tpu.dimension_semantics<parallel>, #tpu.dimension_semantics<parallel>], iteration_bounds = array<i64: 2, 1>, scalar_prefetch = 0 : i64, scratch_operands = 0 : i64, tpu.core_type = #tpu.core_type<tc>, window_params = [{transform_indices = @transform_0, window_bounds = array<i64: 1, 128, 128>}, {transform_indices = @transform_1, window_bounds = array<i64: 1, 128, 128>}, {pipeline_mode = #tpu.pipeline_mode<synchronous>, transform_indices = @transform_2, window_bounds = array<i64: 128, 128>}, {pipeline_mode = #tpu.pipeline_mode<synchronous>, transform_indices = @transform_3, window_bounds = array<i64: 1, 128>}, {transform_indices = @transform_4, window_bounds = array<i64: 1, 128, 1>}, {transform_indices = @transform_5, window_bounds = array<i64: 1, 1, 128>}, {transform_indices = @transform_6, window_bounds = array<i64: 1, 128, 128>}, {transform_indices = @transform_7, window_bounds = array<i64: 1, 1, 128>}]} {
    %c0 = arith.constant 0 : index
    %c0_0 = arith.constant 0 : index
    %c0_1 = arith.constant 0 : index
    %0 = vector.load %arg2[%c0, %c0_0, %c0_1] : memref<1x128x128xbf16, #tpu.memory_space<vmem>>, vector<1x128x128xbf16>
    %c0_2 = arith.constant 0 : index
    %c0_3 = arith.constant 0 : index
    %c0_4 = arith.constant 0 : index
    %1 = vector.load %arg3[%c0_2, %c0_3, %c0_4] : memref<1x128x128xbf16, #tpu.memory_space<vmem>>, vector<1x128x128xbf16>
    %2 = vector.shape_cast %0 : vector<1x128x128xbf16> to vector<128x128xbf16>
    %c0_5 = arith.constant 0 : index
    %c0_6 = arith.constant 0 : index
    %3 = vector.load %arg4[%c0_5, %c0_6] : memref<128x128xbf16, #tpu.memory_space<vmem>>, vector<128x128xbf16>
    %cst = arith.constant dense<0.000000e+00> : vector<128x128xf32>
    %4 = tpu.matmul %2, %3, %cst {dimension_numbers = #tpu.dot_dimension_numbers<[1], [0], [0], [1], [0, 0, 1, 1], [], []>} : vector<128x128xbf16>, vector<128x128xbf16>, vector<128x128xf32> -> vector<128x128xf32>
    %c0_7 = arith.constant 0 : index
    %c0_8 = arith.constant 0 : index
    %5 = vector.load %arg5[%c0_7, %c0_8] : memref<1x128xf32, #tpu.memory_space<vmem>>, vector<1x128xf32>
    %6 = vector.broadcast %5 : vector<1x128xf32> to vector<128x128xf32>
    %7 = arith.addf %4, %6 : vector<128x128xf32>
    %8 = vector.shape_cast %7 : vector<128x128xf32> to vector<1x128x128xf32>
    %9 = arith.truncf %8 : vector<1x128x128xf32> to vector<1x128x128xbf16>
    "tpu.trace_start"() <{level = 10 : i32, message = "bik,bjk->bij"}> : () -> ()
    %cst_9 = arith.constant dense<0.000000e+00> : vector<1x128x128xf32>
    %10 = tpu.matmul %9, %1, %cst_9 {dimension_numbers = #tpu.dot_dimension_numbers<[2], [2], [1], [1], [0, 0, 0, 1, 1, 1], [0], [0]>} : vector<1x128x128xbf16>, vector<1x128x128xbf16>, vector<1x128x128xf32> -> vector<1x128x128xf32>
    "tpu.trace_stop"() : () -> ()
    %c0_10 = arith.constant 0 : index
    %c0_11 = arith.constant 0 : index
    %c0_12 = arith.constant 0 : index
    %11 = vector.load %arg6[%c0_10, %c0_11, %c0_12] : memref<1x128x1xf32, #tpu.memory_space<vmem>>, vector<1x128x1xf32>
    %cst_13 = arith.constant 0.000000e+00 : f32
    %12 = vector.broadcast %cst_13 : f32 to vector<1x128x1xf32>
    %13 = arith.cmpf ogt, %11, %12 : vector<1x128x1xf32>
    %c0_14 = arith.constant 0 : index
    %c0_15 = arith.constant 0 : index
    %c0_16 = arith.constant 0 : index
    %14 = vector.load %arg7[%c0_14, %c0_15, %c0_16] : memref<1x1x128xf32, #tpu.memory_space<vmem>>, vector<1x1x128xf32>
    %cst_17 = arith.constant 0.000000e+00 : f32
    %15 = vector.broadcast %cst_17 : f32 to vector<1x1x128xf32>
    %16 = arith.cmpf ogt, %14, %15 : vector<1x1x128xf32>
    %17 = vector.broadcast %13 : vector<1x128x1xi1> to vector<1x128x128xi1>
    %18 = vector.broadcast %16 : vector<1x1x128xi1> to vector<1x128x128xi1>
    %19 = arith.andi %17, %18 : vector<1x128x128xi1>
    %cst_18 = arith.constant -1.000000e+30 : f32
    %20 = vector.broadcast %cst_18 : f32 to vector<1x128x128xf32>
    %21 = arith.select %19, %10, %20 : vector<1x128x128xi1>, vector<1x128x128xf32>
    %cst_19 = arith.constant dense<0xFF800000> : vector<1x128xf32>
    %22 = vector.multi_reduction <maximumf>, %21, %cst_19 [2] : vector<1x128x128xf32> to vector<1x128xf32>
    %23 = vector.shape_cast %22 : vector<1x128xf32> to vector<1x128x1xf32>
    %24 = tpu.iota {dimensions = array<i32: 2>} : vector<1x128x128xi32>
    %25 = vector.broadcast %23 : vector<1x128x1xf32> to vector<1x128x128xf32>
    %26 = arith.cmpf oeq, %21, %25 : vector<1x128x128xf32>
    %c128_i32 = arith.constant 128 : i32
    %27 = vector.broadcast %c128_i32 : i32 to vector<1x128x128xi32>
    %28 = arith.select %26, %24, %27 : vector<1x128x128xi1>, vector<1x128x128xi32>
    %cst_20 = arith.constant dense<2147483647> : vector<1x128xi32>
    %29 = vector.multi_reduction <minsi>, %28, %cst_20 [2] : vector<1x128x128xi32> to vector<1x128xi32>
    %30 = vector.shape_cast %13 : vector<1x128x1xi1> to vector<1x128xi1>
    %c1_i32 = arith.constant 1 : i32
    %31 = vector.broadcast %c1_i32 : i32 to vector<1x128xi32>
    %32 = arith.addi %29, %31 : vector<1x128xi32>
    %c0_i32 = arith.constant 0 : i32
    %33 = vector.broadcast %c0_i32 : i32 to vector<1x128xi32>
    %34 = arith.select %30, %32, %33 : vector<1x128xi1>, vector<1x128xi32>
    %35 = vector.shape_cast %34 : vector<1x128xi32> to vector<1x1x128xi32>
    %c0_21 = arith.constant 0 : index
    %c0_22 = arith.constant 0 : index
    %c0_23 = arith.constant 0 : index
    %36 = vector.load %arg9[%c0_21, %c0_22, %c0_23] : memref<1x1x128xi32, #tpu.memory_space<vmem>>, vector<1x1x128xi32>
    tpu.vector_store %arg9[%c0_21, %c0_22, %c0_23], %35 {strides = array<i32>} : memref<1x1x128xi32, #tpu.memory_space<vmem>>, vector<1x1x128xi32>,
    %37 = vector.broadcast %23 : vector<1x128x1xf32> to vector<1x128x128xf32>
    %38 = arith.subf %21, %37 : vector<1x128x128xf32>
    %39 = math.exp %38 : vector<1x128x128xf32>
    %cst_24 = arith.constant dense<0.000000e+00> : vector<1x128xf32>
    %40 = vector.multi_reduction <add>, %39, %cst_24 [2] : vector<1x128x128xf32> to vector<1x128xf32>
    %41 = vector.shape_cast %40 : vector<1x128xf32> to vector<1x128x1xf32>
    %42 = math.log %41 : vector<1x128x1xf32>
    %43 = vector.broadcast %42 : vector<1x128x1xf32> to vector<1x128x128xf32>
    %44 = arith.subf %38, %43 : vector<1x128x128xf32>
    %cst_25 = arith.constant 0xFF800000 : f32
    %45 = vector.broadcast %cst_25 : f32 to vector<1x128x128xf32>
    %46 = arith.select %19, %44, %45 : vector<1x128x128xi1>, vector<1x128x128xf32>
    %c0_26 = arith.constant 0 : index
    %c0_27 = arith.constant 0 : index
    %c0_28 = arith.constant 0 : index
    %47 = vector.load %arg8[%c0_26, %c0_27, %c0_28] : memref<1x128x128xf32, #tpu.memory_space<vmem>>, vector<1x128x128xf32>
    tpu.vector_store %arg8[%c0_26, %c0_27, %c0_28], %46 {strides = array<i32>} : memref<1x128x128xf32, #tpu.memory_space<vmem>>, vector<1x128x128xf32>,
    return
  }
  func.func @transform_0(%arg0: i32, %arg1: i32) -> (i32, i32, i32) {
    %c1_i32 = arith.constant 1 : i32
    %c0_i32 = arith.constant 0 : i32
    return %arg0, %arg1, %c1_i32 : i32, i32, i32
  }
  func.func @transform_1(%arg0: i32, %arg1: i32) -> (i32, i32, i32) {
    %c0_i32 = arith.constant 0 : i32
    %c0_i32_0 = arith.constant 0 : i32
    %c0_i32_1 = arith.constant 0 : i32
    return %arg0, %c0_i32, %c0_i32_0 : i32, i32, i32
  }
  func.func @transform_2(%arg0: i32, %arg1: i32) -> (i32, i32) {
    %c0_i32 = arith.constant 0 : i32
    %c0_i32_0 = arith.constant 0 : i32
    %c0_i32_1 = arith.constant 0 : i32
    return %c0_i32, %c0_i32_0 : i32, i32
  }
  func.func @transform_3(%arg0: i32, %arg1: i32) -> (i32, i32) {
    %c0_i32 = arith.constant 0 : i32
    %c0_i32_0 = arith.constant 0 : i32
    %c0_i32_1 = arith.constant 0 : i32
    return %c0_i32, %c0_i32_0 : i32, i32
  }
  func.func @transform_4(%arg0: i32, %arg1: i32) -> (i32, i32, i32) {
    %c0_i32 = arith.constant 0 : i32
    %c0_i32_0 = arith.constant 0 : i32
    return %arg0, %arg1, %c0_i32 : i32, i32, i32
  }
  func.func @transform_5(%arg0: i32, %arg1: i32) -> (i32, i32, i32) {
    %c0_i32 = arith.constant 0 : i32
    %c0_i32_0 = arith.constant 0 : i32
    %c0_i32_1 = arith.constant 0 : i32
    return %arg0, %c0_i32, %c0_i32_0 : i32, i32, i32
  }
  func.func @transform_6(%arg0: i32, %arg1: i32) -> (i32, i32, i32) {
    %c0_i32 = arith.constant 0 : i32
    %c0_i32_0 = arith.constant 0 : i32
    return %arg0, %arg1, %c0_i32 : i32, i32, i32
  }
  func.func @transform_7(%arg0: i32, %arg1: i32) -> (i32, i32, i32) {
    %c0_i32 = arith.constant 0 : i32
    %c0_i32_0 = arith.constant 0 : i32
    return %arg0, %c0_i32, %arg1 : i32, i32, i32
  }
}

module attributes {stable_mosaic.version = 11 : i64} {
  func.func @_mlp_kernel(%arg0: i32, %arg1: memref<256x128xbf16, #tpu.memory_space<vmem>>, %arg2: memref<128x256xbf16, #tpu.memory_space<vmem>>, %arg3: memref<1x256xf32, #tpu.memory_space<vmem>>, %arg4: memref<256x256xbf16, #tpu.memory_space<vmem>>) attributes {dimension_semantics = [#tpu.dimension_semantics<parallel>], iteration_bounds = array<i64: 1>, scalar_prefetch = 0 : i64, scratch_operands = 0 : i64, tpu.core_type = #tpu.core_type<tc>, window_params = [{transform_indices = @transform_0, window_bounds = array<i64: 256, 128>}, {pipeline_mode = #tpu.pipeline_mode<synchronous>, transform_indices = @transform_1, window_bounds = array<i64: 128, 256>}, {pipeline_mode = #tpu.pipeline_mode<synchronous>, transform_indices = @transform_2, window_bounds = array<i64: 1, 256>}, {transform_indices = @transform_3, window_bounds = array<i64: 256, 256>}]} {
    %c0 = arith.constant 0 : index
    %c0_0 = arith.constant 0 : index
    %0 = vector.load %arg1[%c0, %c0_0] : memref<256x128xbf16, #tpu.memory_space<vmem>>, vector<256x128xbf16>
    %c0_1 = arith.constant 0 : index
    %c0_2 = arith.constant 0 : index
    %1 = vector.load %arg2[%c0_1, %c0_2] : memref<128x256xbf16, #tpu.memory_space<vmem>>, vector<128x256xbf16>
    %cst = arith.constant dense<0.000000e+00> : vector<256x256xf32>
    %2 = tpu.matmul %0, %1, %cst {dimension_numbers = #tpu.dot_dimension_numbers<[1], [0], [0], [1], [0, 0, 1, 1], [], []>} : vector<256x128xbf16>, vector<128x256xbf16>, vector<256x256xf32> -> vector<256x256xf32>
    %c0_3 = arith.constant 0 : index
    %c0_4 = arith.constant 0 : index
    %3 = vector.load %arg3[%c0_3, %c0_4] : memref<1x256xf32, #tpu.memory_space<vmem>>, vector<1x256xf32>
    %4 = vector.broadcast %3 : vector<1x256xf32> to vector<256x256xf32>
    %5 = arith.addf %2, %4 : vector<256x256xf32>
    %cst_5 = arith.constant 0.000000e+00 : f32
    %6 = vector.broadcast %cst_5 : f32 to vector<256x256xf32>
    %7 = arith.maximumf %5, %6 : vector<256x256xf32>
    %8 = arith.truncf %7 : vector<256x256xf32> to vector<256x256xbf16>
    %c0_6 = arith.constant 0 : index
    %c0_7 = arith.constant 0 : index
    %9 = vector.load %arg4[%c0_6, %c0_7] : memref<256x256xbf16, #tpu.memory_space<vmem>>, vector<256x256xbf16>
    tpu.vector_store %arg4[%c0_6, %c0_7], %8 {strides = array<i32>} : memref<256x256xbf16, #tpu.memory_space<vmem>>, vector<256x256xbf16>,
    return
  }
  func.func @transform_0(%arg0: i32) -> (i32, i32) {
    %c0_i32 = arith.constant 0 : i32
    %c0_i32_0 = arith.constant 0 : i32
    return %arg0, %c0_i32 : i32, i32
  }
  func.func @transform_1(%arg0: i32) -> (i32, i32) {
    %c0_i32 = arith.constant 0 : i32
    %c0_i32_0 = arith.constant 0 : i32
    %c0_i32_1 = arith.constant 0 : i32
    return %c0_i32, %c0_i32_0 : i32, i32
  }
  func.func @transform_2(%arg0: i32) -> (i32, i32) {
    %c0_i32 = arith.constant 0 : i32
    %c0_i32_0 = arith.constant 0 : i32
    %c0_i32_1 = arith.constant 0 : i32
    return %c0_i32, %c0_i32_0 : i32, i32
  }
  func.func @transform_3(%arg0: i32) -> (i32, i32) {
    %c0_i32 = arith.constant 0 : i32
    %c0_i32_0 = arith.constant 0 : i32
    return %arg0, %c0_i32 : i32, i32
  }
}

</mosaic_0001>

<bundles_post_ra>
// kernel: _forward_impl.3
= control target key start
LH: loop header
LB: loop body
LE: loop exit
PB: predicated region body
PF: predicated region fallthrough
CT: control target
= control target key end

     0   :  { %13 = vsyncpa [#allocation5], 0  ;;  %s3472_s0 = inlined_call_operand.vmem [shape: bf16[2,128,256], index: 0, kind: input, shape index: {}, may-alias: {0,1}]   ;;  %s3473_s1 = inlined_call_operand.vmem [shape: bf16[2,128,256], index: 1, kind: input, shape index: {}, may-alias: {0,1}]   ;;  %s3474_s2 = inlined_call_operand.vmem [shape: bf16[128,128], index: 2, kind: input, shape index: {}]   ;;  %s3475_s3 = inlined_call_operand.vmem [shape: f32[1,128], index: 3, kind: input, shape index: {}]   ;;  %s3476_s4 = inlined_call_operand.vmem [shape: f32[2,128,1], index: 4, kind: input, shape index: {}]   ;;  %s3477_s5 = inlined_call_operand.vmem [shape: f32[2,1,128], index: 5, kind: input, shape index: {}]   ;;  %s3478_s6 = inlined_call_operand.hbm [shape: f32[2,128,128], index: 6, kind: output, shape index: {0}]   ;;  %s3479_s7 = inlined_call_operand.hbm [shape: s32[2,1,128], index: 7, kind: output, shape index: {1}]  }
   0x1   :  { %15 = vsyncpa [#allocation5 + $0x1], 0 }
   0x2   :  { %16 = vsyncpa [#allocation7], 0 }
   0x3   :  { %18 = vsyncpa [#allocation7 + $0x1], 0  ;;  %s2443_s24 = smov 0   ;;  %s2445_s25 = smov 0  }
   0x4   :  { %s2447_s26 = smov 0   ;;  %s2449_s27 = smov 0  }
   0x5   :  { %s2451_s28 = smov 0   ;;  %s2453_s29 = smov 0  }
   0x6 LB: > { %s1974_s30 = sadd.s32 4294967295, %s2396_s29   ;;  %s1975_s8 = sadd.s32 4294967294, %s2396_s29   ;;  %s2396_s29 = sphi %s2453_s29, %s24_s29   ;;  %s2392_s28 = sphi %s2451_s28, %s3679_s28   ;;  %s2388_s27 = sphi %s2449_s27, %s3678_s27   ;;  %s2384_s26 = sphi %s2447_s26, %s3677_s26   ;;  %s2380_s25 = sphi %s2445_s25, %s3676_s25   ;;  %s2376_s24 = sphi %s2443_s24, %s3675_s24  }
   0x7   : > { %s36_s9 = sadd.s32 1, %s2392_s28  ;;  %s45_s10 = sadd.s32 1, %s2384_s26 }
   0x8   : > { %p38_p0 = scmp.ge.s32.totalorder %s36_s9, 2  ;;  %p52_p1 = scmp.ne.s32.totalorder %s2384_s26, %s2380_s25 }
   0x9   : > { %p53_p2 = scmp.eq.s32.totalorder %s2396_s29, 0  ;;  %p206_p3 = scmp.eq.s32.totalorder %s1974_s30, 1 }
   0xa   : > { %s3681_s9 = smov (%p38_p0, %s36_s9), 0  ;;  %p211_p6 = scmp.ne.s32.totalorder %s2380_s25, %s2376_s24 }
   0xb   : > { %p2482_p4 = por %p53_p2, %p52_p1  ;;  %p2486_p5 = por %p206_p3, %p52_p1 }
   0xc   : > { %s40_s13 = ssub.s32 %s2392_s28, %s3681_s9  ;;  %p212_p8 = scmp.eq.s32.totalorder %s1975_s8, 1 }
   0xd   : > { %p43_p7 = scmp.eq.s32.totalorder %s40_s13, 0  ;;  %p1977_p10 = scmp.ge.s32.totalorder %s2396_s29, 2 }
   0xe   : > { %p2497_p9 = por %p212_p8, %p211_p6 }
   0xf   : > { %s2495_s14 = scalar_select %p43_p7, %s2384_s26, %s45_s10  }
  0x10   : > { %262 = sbr.rel (%p1977_p10) target bundleno = 49 (0x31), region = 24 }
  0x15   : > { %265 = sbr.rel (!%p2482_p4) target bundleno = 35 (0x23), region = 28  ;;  %s267_s16 = sand.u32 (%p2482_p4), 1, %s2384_s26  }
  0x16   : > { %s2037_s17 = sshll.u32 (%p2482_p4), %s2392_s28, 7  ;;  %s1978_s18 = sshll.u32 (%p2482_p4), %s267_s16, 6 }
  0x17   : > { %s2511_s21 = scalar_lea.vmem (%p2482_p4), %s3472_s0, %s2037_s17  ;;  %s269_s22 = scalar_lea.vmem (%p2482_p4), [#allocation2], %s1978_s18 }
  0x18   : > { %v1981_v0 = vld [vmem:[%s2511_s21 + $0x4] sm:$0xf] (%p2482_p4)  ;;  %v1982_v1 = vld [vmem:[%s2511_s21 + $0xc] sm:$0xf] (%p2482_p4)  ;;  %v1983_v2 = vld [vmem:[%s2511_s21 + $0x14] sm:$0xf] (%p2482_p4) }
  0x19   : > { %294 = vst [vmem:[%s269_s22] sm:$0xf] (%p2482_p4), %v1981_v0  ;;  %296 = vst [vmem:[%s269_s22 + $0x4] sm:$0xf] (%p2482_p4), %v1982_v1  ;;  %v1984_v3 = vld [vmem:[%s2511_s21 + $0x1c] sm:$0xf] (%p2482_p4) }
  0x1a   : > { %v1985_v4 = vld [vmem:[%s2511_s21 + $0x24] sm:$0xf]  ;;  %298 = vst [vmem:[%s269_s22 + $0x8] sm:$0xf] %v1983_v2  ;;  %300 = vst [vmem:[%s269_s22 + $0xc] sm:$0xf] %v1984_v3 }
  0x1b   : > { %302 = vst [vmem:[%s269_s22 + $0x10] sm:$0xf] %v1985_v4  ;;  %v1986_v5 = vld [vmem:[%s2511_s21 + $0x2c] sm:$0xf]  ;;  %v1987_v6 = vld [vmem:[%s2511_s21 + $0x34] sm:$0xf] }
  0x1c   : > { %v1988_v7 = vld [vmem:[%s2511_s21 + $0x3c] sm:$0xf]  ;;  %304 = vst [vmem:[%s269_s22 + $0x14] sm:$0xf] %v1986_v5  ;;  %306 = vst [vmem:[%s269_s22 + $0x18] sm:$0xf] %v1987_v6 }
  0x1d   : > { %308 = vst [vmem:[%s269_s22 + $0x1c] sm:$0xf] %v1988_v7  ;;  %v1989_v8 = vld [vmem:[%s2511_s21 + $0x44] sm:$0xf]  ;;  %v1990_v9 = vld [vmem:[%s2511_s21 + $0x4c] sm:$0xf] }
  0x1e   : > { %v1991_v10 = vld [vmem:[%s2511_s21 + $0x54] sm:$0xf]  ;;  %310 = vst [vmem:[%s269_s22 + $0x20] sm:$0xf] %v1989_v8  ;;  %312 = vst [vmem:[%s269_s22 + $0x24] sm:$0xf] %v1990_v9 }
  0x1f   : > { %314 = vst [vmem:[%s269_s22 + $0x28] sm:$0xf] %v1991_v10  ;;  %v1992_v11 = vld [vmem:[%s2511_s21 + $0x5c] sm:$0xf]  ;;  %v1993_v12 = vld [vmem:[%s2511_s21 + $0x64] sm:$0xf] }
  0x20   : > { %v1994_v13 = vld [vmem:[%s2511_s21 + $0x6c] sm:$0xf]  ;;  %316 = vst [vmem:[%s269_s22 + $0x2c] sm:$0xf] %v1992_v11  ;;  %318 = vst [vmem:[%s269_s22 + $0x30] sm:$0xf] %v1993_v12 }
  0x21   : > { %320 = vst [vmem:[%s269_s22 + $0x34] sm:$0xf] %v1994_v13  ;;  %v1995_v14 = vld [vmem:[%s2511_s21 + $0x74] sm:$0xf]  ;;  %v1996_v15 = vld [vmem:[%s2511_s21 + $0x7c] sm:$0xf] }
  0x22   : > { %322 = vst [vmem:[%s269_s22 + $0x38] sm:$0xf] %v1995_v14  ;;  %324 = vst [vmem:[%s269_s22 + $0x3c] sm:$0xf] %v1996_v15 }
  0x23 PF: > { %380 = sbr.rel (!%p2482_p4) target bundleno = 49 (0x31), region = 69  ;;  %s382_s23 = sand.u32 (%p2482_p4), 1, %s2384_s26  }
  0x24   : > { %s2038_s30 = sshll.u32 (%p2482_p4), %s2392_s28, 7  ;;  %s1997_s8 = sshll.u32 (%p2482_p4), %s382_s23, 6 }
  0x25   : > { %s2536_s16 = scalar_lea.vmem (%p2482_p4), %s3473_s1, %s2038_s30  ;;  %s384_s11 = scalar_lea.vmem (%p2482_p4), [#allocation3], %s1997_s8 }
  0x26   : > { %v404_v16 = vld [vmem:[%s2536_s16] sm:$0xf] (%p2482_p4)  ;;  %v406_v17 = vld [vmem:[%s2536_s16 + $0x8] sm:$0xf] (%p2482_p4)  ;;  %v408_v18 = vld [vmem:[%s2536_s16 + $0x10] sm:$0xf] (%p2482_p4) }
  0x27   : > { %405 = vst [vmem:[%s384_s11] sm:$0xf] (%p2482_p4), %v404_v16  ;;  %407 = vst [vmem:[%s384_s11 + $0x4] sm:$0xf] (%p2482_p4), %v406_v17  ;;  %v410_v19 = vld [vmem:[%s2536_s16 + $0x18] sm:$0xf] (%p2482_p4) }
  0x28   : > { %v412_v20 = vld [vmem:[%s2536_s16 + $0x20] sm:$0xf]  ;;  %409 = vst [vmem:[%s384_s11 + $0x8] sm:$0xf] %v408_v18  ;;  %411 = vst [vmem:[%s384_s11 + $0xc] sm:$0xf] %v410_v19 }
  0x29   : > { %413 = vst [vmem:[%s384_s11 + $0x10] sm:$0xf] %v412_v20  ;;  %v414_v21 = vld [vmem:[%s2536_s16 + $0x28] sm:$0xf]  ;;  %v416_v22 = vld [vmem:[%s2536_s16 + $0x30] sm:$0xf] }
  0x2a   : > { %v418_v23 = vld [vmem:[%s2536_s16 + $0x38] sm:$0xf]  ;;  %415 = vst [vmem:[%s384_s11 + $0x14] sm:$0xf] %v414_v21  ;;  %417 = vst [vmem:[%s384_s11 + $0x18] sm:$0xf] %v416_v22 }
  0x2b   : > { %419 = vst [vmem:[%s384_s11 + $0x1c] sm:$0xf] %v418_v23  ;;  %v420_v24 = vld [vmem:[%s2536_s16 + $0x40] sm:$0xf]  ;;  %v422_v25 = vld [vmem:[%s2536_s16 + $0x48] sm:$0xf] }
  0x2c   : > { %v424_v26 = vld [vmem:[%s2536_s16 + $0x50] sm:$0xf]  ;;  %421 = vst [vmem:[%s384_s11 + $0x20] sm:$0xf] %v420_v24  ;;  %423 = vst [vmem:[%s384_s11 + $0x24] sm:$0xf] %v422_v25 }
  0x2d   : > { %425 = vst [vmem:[%s384_s11 + $0x28] sm:$0xf] %v424_v26  ;;  %v426_v27 = vld [vmem:[%s2536_s16 + $0x58] sm:$0xf]  ;;  %v428_v28 = vld [vmem:[%s2536_s16 + $0x60] sm:$0xf] }
  0x2e   : > { %v430_v29 = vld [vmem:[%s2536_s16 + $0x68] sm:$0xf]  ;;  %427 = vst [vmem:[%s384_s11 + $0x2c] sm:$0xf] %v426_v27  ;;  %429 = vst [vmem:[%s384_s11 + $0x30] sm:$0xf] %v428_v28 }
  0x2f   : > { %431 = vst [vmem:[%s384_s11 + $0x34] sm:$0xf] %v430_v29  ;;  %v432_v30 = vld [vmem:[%s2536_s16 + $0x70] sm:$0xf]  ;;  %v434_v31 = vld [vmem:[%s2536_s16 + $0x78] sm:$0xf] }
  0x30   : > { %433 = vst [vmem:[%s384_s11 + $0x38] sm:$0xf] %v432_v30  ;;  %435 = vst [vmem:[%s384_s11 + $0x3c] sm:$0xf] %v434_v31 }
  0x31 PF: > { %p2000_p11 = scmp.ge.s32.totalorder %s2396_s29, 1  ;;  %p509_p12 = scmp.lt.s32.totalorder %s2396_s29, 3 }
  0x33   : > { %p510_p13 = pnand %p2000_p11, %p509_p12 }
  0x35   : > { %513 = sbr.rel (%p510_p13) target bundleno = 1102 (0x44e), region = 118 }
  0x3a   : > { %v2202_v32 = vld [vmem:[%s3474_s2 + $0x38] sm:$0xff]   ;;  %s2560_s19 = sand.u32 1, %s2380_s25   ;;  %v2203_v33 = vld [vmem:[%s3474_s2 + $0x30] sm:$0xff]   ;;  %v2204_v34 = vld [vmem:[%s3474_s2 + $0x28] sm:$0xff]   ;;  %p576_p0 = scmp.lt.s32.totalorder %s2388_s27, 1  ;;  %v2398_v56 = vmov 0  }
  0x3b   : > { %2073 = vmatprep.subr.bf16.mxu0 %v2202_v32  ;;  %s2001_s22 = sshll.u32 %s2560_s19, 6  ;;  %v2205_v35 = vld [vmem:[%s3474_s2 + $0x20] sm:$0xff]   ;;  %v2206_v37 = vld [vmem:[%s3474_s2 + $0x18] sm:$0xff]   ;;  %v2207_v38 = vld [vmem:[%s3474_s2 + $0x10] sm:$0xff]   ;;  %2201 = vset.pattern.permute.xlu1 %v2398_v56  ;;  %s1784_s17 = scalar_lea.sflag [#allocation5], %s2560_s19 }
  0x3c   : > { %2074 = vmatpush3.bf16.msra.mxu0 %v2202_v32  ;;  %s2572_s13 = scalar_lea.vmem [#allocation2], %s2001_s22  ;;  %s2581_s20 = scalar_lea.vmem [#allocation3], %s2001_s22  ;;  %v2208_v41 = vld [vmem:[%s3474_s2 + $0x8] sm:$0xff]   ;;  %v2209_v42 = vld [vmem:[%s3474_s2] sm:$0xff]   ;;  %2200 = vset.pattern.permute.xlu0 %v2398_v56 }
  0x3d   : > { %2075 = vmatprep.subr.bf16.mxu0 %v2203_v33  ;;  %v2210_v36 = vld [vmem:[%s2572_s13] sm:$0xff]   ;;  %v2218_v39 = vld [vmem:[%s2581_s20 + $0x38] sm:$0xff]   ;;  %v2219_v40 = vld [vmem:[%s2581_s20 + $0x30] sm:$0xff]   ;;  %s2608_s8 = scalar_select %p576_p0, %s2388_s27, 1 }
  0x3e   : > { %2089 = vmatprep.mubr.bf16.mxu0 %v2210_v36  ;;  %2105 = vmatprep.subr.bf16.mxu1 %v2218_v39  ;;  %v2220_v43 = vld [vmem:[%s2581_s20 + $0x28] sm:$0xff]   ;;  %v2212_v45 = vld [vmem:[%s2572_s13 + $0x10] sm:$0xff]   ;;  %v2221_v46 = vld [vmem:[%s2581_s20 + $0x20] sm:$0xff]   ;;  %s2003_s22 = sshll.u32 %s2560_s19, 7 }
  0x3f   : > { %2106 = vmatpush3.bf16.xpose.msra.mxu1 %v2218_v39  ;;  %v2211_v44 = vld [vmem:[%s2572_s13 + $0x8] sm:$0xff]   ;;  %v2213_v47 = vld [vmem:[%s2572_s13 + $0x18] sm:$0xff]   ;;  %v2214_v48 = vld [vmem:[%s2572_s13 + $0x20] sm:$0xff]   ;;  %s2039_s10 = sshll.u32 %s2608_s8, 7  ;;  %s587_s23 = scalar_lea.vmem %s3477_s5, %s2608_s8 }
  0x40   : > { %2076 = vmatpush3.bf16.msra.mxu0 %v2203_v33  ;;  %2107 = vmatprep.subr.bf16.mxu1 %v2219_v40  ;;  %v2222_v49 = vld [vmem:[%s2581_s20 + $0x18] sm:$0xff]   ;;  %v2215_v50 = vld [vmem:[%s2572_s13 + $0x28] sm:$0xff]   ;;  %v2216_v51 = vld [vmem:[%s2572_s13 + $0x30] sm:$0xff]   ;;  %s2614_s11 = scalar_lea.vmem %s3476_s4, %s2039_s10  ;;  %s3250_s30 = scalar_lea.vmem [#allocation4], %s2003_s22 }
  0x41   : > { %2077 = vmatprep.subr.bf16.mxu0 %v2204_v34  ;;  %v2223_v52 = vld [vmem:[%s2581_s20 + $0x10] sm:$0xff]   ;;  %v2217_v53 = vld [vmem:[%s2572_s13 + $0x38] sm:$0xff]   ;;  %v2224_v54 = vld [vmem:[%s2581_s20 + $0x8] sm:$0xff]   ;;  %s2040_s8 = sshll.u32 %s2388_s27, 11  ;;  %s1803_s10 = sshll.u32 %s3250_s30, 4  ;;  %s3365_s10 = int_to_ptr.vmem [resolvable:$true] %s1803_s10 }
  0x42   : > { %v2225_v55 = vld [vmem:[%s2581_s20] sm:$0xff]   ;;  %v2617_v57 = vld [vmem:[%s2614_s11 + $0x10] sm:$0xff]  ;;  %v2623_v59 = vld [vmem:[%s2614_s11 + $0x18] sm:$0xff]  ;;  %s2290_s18 = scalar_lea.vmem %s3365_s10, 2048  ;;  %s2399_s20 = smov [#allocation4]  }
  0x43   : > { %3544 = vst [vmem:[#allocation10_spill] sm:$0xff] %v2617_v57  ;;  %v2620_v58 = vld [vmem:[%s2614_s11] sm:$0xff]  ;;  %3546 = vst [vmem:[#allocation12_spill] sm:$0xff] %v2623_v59  ;;  %vm3495_vm0 = vcmp.gt.f32.partialorder %v2617_v57, 0.0  ;;  %vm3493_vm2 = vcmp.gt.f32.partialorder %v2623_v59, 0.0  ;;  %v2629_v60 = vld [vmem:[%s2614_s11 + $0x8] sm:$0xff]  ;;  %p2291_p1 = scmp.ne.s32.totalorder %s3365_s10, %s2290_s18 }
  0x44   : > { %2078 = vmatpush3.bf16.msra.mxu0 %v2204_v34  ;;  %3545 = vst [vmem:[#allocation11_spill] sm:$0xff] %v2620_v58  ;;  %vm3494_vm1 = vcmp.gt.f32.partialorder %v2620_v58, 0.0  ;;  %3547 = vst [vmem:[#allocation13_spill] sm:$0xff] %v2629_v60  ;;  %v1027_v61 = vsel %vm3495_vm0, 1, %v2398_v56  ;;  %vm3491_vm3 = vcmp.gt.f32.partialorder %v2629_v60, 0.0  ;;  %v2639_v63 = vld [vmem:[%s2614_s11 + $0x28] sm:$0xff] }
  0x45   : > { %2079 = vmatprep.subr.bf16.mxu0 %v2205_v35  ;;  %v1025_v62 = vsel %vm3494_vm1, 1, %v2398_v56  ;;  %3548 = vst [vmem:[#allocation14_spill] sm:$0xff] %v2639_v63  ;;  %v2642_v0 = vld [vmem:[%s2614_s11 + $0x20] sm:$0xff]  ;;  %1048 = vperm.xlu1 %2201, %v1027_v61   ;;  %v1028_v1 = vsel %vm3493_vm2, 1, %v2398_v56  ;;  %v1026_v2 = vsel %vm3491_vm3, 1, %v2398_v56  ;;  %vm3488_vm4 = vcmp.gt.f32.partialorder %v2639_v63, 0.0  ;;  %p2292_p2 = pnand %p2291_p1, %p2486_p5 }
  0x46   : > { %3549 = vst [vmem:[#allocation15_spill] sm:$0xff] %v2642_v0  ;;  %1042 = vperm.xlu0 %2200, %v1025_v62   ;;  %vm3490_vm5 = vcmp.gt.f32.partialorder %v2642_v0, 0.0  ;;  %v2653_v3 = vld [vmem:[%s2614_s11 + $0x38] sm:$0xff]  ;;  %v2656_v4 = vld [vmem:[%s2614_s11 + $0x30] sm:$0xff]  ;;  %v1030_v5 = vsel %vm3488_vm4, 1, %v2398_v56  ;;  %v2667_v7 = vld [vmem:[%s2614_s11 + $0x48] sm:$0xff] }
  0x47   : > { %2108 = vmatpush3.bf16.xpose.msra.mxu1 %v2219_v40  ;;  %3550 = vst [vmem:[#allocation16_spill] sm:$0xff] %v2653_v3  ;;  %3551 = vst [vmem:[#allocation17_spill] sm:$0xff] %v2656_v4  ;;  %v1029_v6 = vsel %vm3490_vm5, 1, %v2398_v56  ;;  %vm3489_vm6 = vcmp.gt.f32.partialorder %v2653_v3, 0.0  ;;  %vm3492_vm7 = vcmp.gt.f32.partialorder %v2656_v4, 0.0  ;;  %v2670_v8 = vld [vmem:[%s2614_s11 + $0x40] sm:$0xff]  ;;  %p2293_p3 = pneg %p2292_p2 }
  0x48   : > { %2080 = vmatpush3.bf16.msra.mxu0 %v2205_v35  ;;  %2109 = vmatprep.subr.bf16.mxu1 %v2220_v43  ;;  %3552 = vst [vmem:[#allocation18_spill] sm:$0xff] %v2667_v7  ;;  %3553 = vst [vmem:[#allocation19_spill] sm:$0xff] %v2670_v8  ;;  %v1032_v9 = vsel %vm3489_vm6, 1, %v2398_v56  ;;  %v1031_v10 = vsel %vm3492_vm7, 1, %v2398_v56  ;;  %vm3484_vm8 = vcmp.gt.f32.partialorder %v2667_v7, 0.0  ;;  %vm3485_vm9 = vcmp.gt.f32.partialorder %v2670_v8, 0.0 }
  0x49   : > { %2081 = vmatprep.subr.bf16.mxu0 %v2206_v37  ;;  %1051 = vperm.xlu1 %2201, %v1028_v1   ;;  %v2681_v11 = vld [vmem:[%s2614_s11 + $0x58] sm:$0xff]  ;;  %v2684_v12 = vld [vmem:[%s2614_s11 + $0x50] sm:$0xff]  ;;  %v1034_v13 = vsel %vm3484_vm8, 1, %v2398_v56  ;;  %v1033_v14 = vsel %vm3485_vm9, 1, %v2398_v56  ;;  %v2695_v15 = vld [vmem:[%s2614_s11 + $0x68] sm:$0xff]  ;;  %s2294_s21 = sshll.u32 %s2399_s20, 4  ;;  %s2295_s21 = int_to_ptr.vmem [resolvable:$false] %s2294_s21 }
  0x4a   : > { %1045 = vperm.xlu0 %2200, %v1026_v2   ;;  %3554 = vst [vmem:[#allocation20_spill] sm:$0xff] %v2681_v11  ;;  %3555 = vst [vmem:[#allocation21_spill] sm:$0xff] %v2684_v12  ;;  %vm3486_vm10 = vcmp.gt.f32.partialorder %v2681_v11, 0.0  ;;  %vm3487_vm11 = vcmp.gt.f32.partialorder %v2684_v12, 0.0  ;;  %v2698_v16 = vld [vmem:[%s2614_s11 + $0x60] sm:$0xff]  ;;  %vm3481_vm12 = vcmp.gt.f32.partialorder %v2695_v15, 0.0  ;;  %p2297_p4 = scmp.lt.s32.totalorder %s3365_s10, %s2295_s21 }
  0x4b   : > { %3556 = vst [vmem:[#allocation22_spill] sm:$0xff] %v2695_v15  ;;  %3557 = vst [vmem:[#allocation23_spill] sm:$0xff] %v2698_v16  ;;  %v1036_v17 = vsel %vm3486_vm10, 1, %v2398_v56  ;;  %v1035_v18 = vsel %vm3487_vm11, 1, %v2398_v56  ;;  %vm3483_vm13 = vcmp.gt.f32.partialorder %v2698_v16, 0.0  ;;  %v2709_v19 = vld [vmem:[%s2614_s11 + $0x78] sm:$0xff] }
  0x4c   : > { %2082 = vmatpush3.bf16.msra.mxu0 %v2206_v37  ;;  %3558 = vst [vmem:[#allocation24_spill] sm:$0xff] %v2709_v19  ;;  %v2712_v20 = vld [vmem:[%s2614_s11 + $0x70] sm:$0xff]  ;;  %v1038_v21 = vsel %vm3481_vm12, 1, %v2398_v56  ;;  %v1037_v22 = vsel %vm3483_vm13, 1, %v2398_v56  ;;  %vm3480_vm14 = vcmp.gt.f32.partialorder %v2709_v19, 0.0  ;;  %s3363_s11 = scalar_lea.hbm %s3478_s6, %s2040_s8 }
  0x4d   : > { %2083 = vmatprep.subr.bf16.mxu0 %v2207_v38  ;;  %1057 = vperm.xlu1 %2201, %v1030_v5   ;;  %3559 = vst [vmem:[#allocation25_spill] sm:$0xff] %v2712_v20  ;;  %vm3482_vm15 = vcmp.gt.f32.partialorder %v2712_v20, 0.0  ;;  %v1040_v23 = vsel %vm3480_vm14, 1, %v2398_v56  ;;  %v2006_v28 = vld [vmem:[%s3475_s3] ss:$0 sm:$0xff] }
  0x4e   : > { %1054 = vperm.xlu0 %2200, %v1029_v6   ;;  %v1039_v24 = vsel %vm3482_vm15, 1, %v2398_v56 }
  0x4f   : > { %2110 = vmatpush3.bf16.xpose.msra.mxu1 %v2220_v43 }
  0x50   : > { %2084 = vmatpush3.bf16.msra.mxu0 %v2207_v38  ;;  %2111 = vmatprep.subr.bf16.mxu1 %v2221_v46 }
  0x51   : > { %2085 = vmatprep.subr.bf16.mxu0 %v2208_v41  ;;  %1063 = vperm.xlu1 %2201, %v1032_v9  }
  0x52   : > { %1060 = vperm.xlu0 %2200, %v1031_v10  }
  0x54   : > { %2086 = vmatpush3.bf16.msra.mxu0 %v2208_v41 }
  0x55   : > { %2087 = vmatprep.subr.bf16.mxu0 %v2209_v42  ;;  %1069 = vperm.xlu1 %2201, %v1034_v13  }
  0x56   : > { %1066 = vperm.xlu0 %2200, %v1033_v14  }
  0x57   : > { %2112 = vmatpush3.bf16.xpose.msra.mxu1 %v2221_v46 }
  0x58   : > { %2088 = vmatpush3.bf16.msra.mxu0 %v2209_v42  ;;  %2113 = vmatprep.subr.bf16.mxu1 %v2222_v49 }
  0x59   : > { %1075 = vperm.xlu1 %2201, %v1036_v17   ;;  %v1106_v17 = vlaneseq }
  0x5a   : > { %1072 = vperm.xlu0 %2200, %v1035_v18  }
  0x5b   : > { %2090 = vmatmul.mubr.bf16.vlgmr.msra.gmra.mxu0 %v2211_v44 }
  0x5c   : > { %2093 = vmatprep.mubr.bf16.mxu0 %v2212_v45 }
  0x5d   : > { %1081 = vperm.xlu1 %2201, %v1038_v21   ;;  %v1023_v21 = vld [vmem:[%s587_s23] sm:$0x1]  ;;  %s2296_s23 = scalar_lea.vmem %s2295_s21, 4096 }
  0x5e   : > { %1078 = vperm.xlu0 %2200, %v1037_v22   ;;  %v2736_v22 = vshrl.u32 %v1106_v17, 7  ;;  %vm1024_vm14 = vcmp.gt.f32.partialorder %v1023_v21, 0.0  ;;  %p2298_p6 = scmp.lt.s32.totalorder %s2296_s23, %s2290_s18 }
  0x5f   : > { %2114 = vmatpush3.bf16.xpose.msra.mxu1 %v2222_v49 }
  0x60   : > { %2115 = vmatprep.subr.bf16.mxu1 %v2223_v52  ;;  %3560 = vst [vmem:[#allocation26_spill] sm:$0xff] %v2736_v22  ;;  %p2299_p7 = por %p2298_p6, %p2297_p4 }
  0x61   : > { %1087 = vperm.xlu1 %2201, %v1040_v23  }
  0x62   : > { %1084 = vperm.xlu0 %2200, %v1039_v24   ;;  %p2300_p8 = pnand %p2299_p7, %p2293_p3 }
  0x63   : > { %2094 = vmatmul.mubr.bf16.gmra.mxu0 %v2213_v47 }
  0x64   : > { %2097 = vmatprep.mubr.bf16.mxu0 %v2214_v48 }
  0x67   : > { %2116 = vmatpush3.bf16.xpose.msra.mxu1 %v2223_v52 }
  0x68   : > { %2117 = vmatprep.subr.bf16.mxu1 %v2224_v54 }
  0x6b   : > { %2098 = vmatmul.mubr.bf16.gmra.mxu0 %v2215_v50 }
  0x6c   : > { %2101 = vmatprep.mubr.bf16.mxu0 %v2216_v51 }
  0x6f   : > { %2118 = vmatpush3.bf16.xpose.msra.mxu1 %v2224_v54 }
  0x70   : > { %2119 = vmatprep.subr.bf16.mxu1 %v2225_v55 }
  0x73   : > { %2102 = vmatmul.mubr.bf16.gmra.mxu0 %v2217_v53 }
  0x77   : > { %2120 = vmatpush3.bf16.xpose.msra.mxu1 %v2225_v55 }
  0xc0   : > { %v1049_v23 = vpop.permute.xlu1 %1048 }
  0xc1   : > { %v1043_v18 = vpop.permute.xlu0 %1042  ;;  %vm1091_vm12 = vcmp.eq.s32.totalorder %v1049_v23, 1 }
  0xc2   : > { %vm1089_vm8 = vcmp.eq.s32.totalorder %v1043_v18, 1  ;;  %v3588_v18 = vmov 0 }
  0xc5   : > { %v1046_v24 = vpop.permute.xlu0 %1045 }
 0x11b   : > { %v2091_v25 = vpop.f32.mrf.mxu0 }
 0x11c   : > { %v784_v33 = vadd.f32 %v2091_v25, %v2006_v28  ;;  %v1108_v25 = vsub.s32 0, %v2736_v22 }
 0x11d   : > { %v775_v26 = vpop.f32.mrf.mxu0 }
 0x11e   : > { %v776_v31 = vadd.f32 %v2006_v28, %v775_v26  ;;  %v1105_v26 = vsel %vm1024_vm14, 1, %v2398_v56 }
 0x11f   : > { %v2092_v27 = vpop.f32.mrf.mxu0 }
 0x120   : > { %v787_v29 = vadd.f32 %v2092_v27, %v2006_v28  ;;  %v2740_v27 = vrot.slane %v1105_v26, %v1108_v25 }
 0x121   : > { %v778_v30 = vpop.f32.mrf.mxu0 }
 0x122   : > { %v779_v32 = vadd.f32 %v2006_v28, %v778_v30  ;;  %v839_v36 = vpack.c.bf16 %v787_v29, %v784_v33  ;;  %v1055_v29 = vpop.permute.xlu0 %1054  ;;  %vm1110_vm15 = vcmp.eq.s32.totalorder %v2740_v27, 1 }
 0x123   : > { %v2095_v34 = vpop.f32.mrf.mxu0  ;;  %vm2745_vm13 = vmand %vm1091_vm12, %vm1110_vm15  ;;  %vm1090_vm12 = vcmp.eq.s32.totalorder %v1046_v24, 1  ;;  %v3591_v24 = vmov 0 }
 0x124   : > { %v838_v35 = vpack.c.bf16 %v779_v32, %v776_v31  ;;  %v800_v43 = vadd.f32 %v2095_v34, %v2006_v28  ;;  %v3561_v31 = vmov 0  ;;  %vm2756_vm14 = vmand %vm1089_vm8, %vm1110_vm15 }
 0x125   : > { %v791_v37 = vpop.f32.mrf.mxu0  ;;  %v3562_v31 = vsel %vm2745_vm13, 4294967295, %v3561_v31  ;;  %vm2767_vm10 = vmand %vm1090_vm12, %vm1110_vm15 }
 0x126   : > { %2121 = vmatprep.mubr.bf16.mxu1 %v838_v35  ;;  %v792_v41 = vadd.f32 %v2006_v28, %v791_v37  ;;  %3563 = vst [vmem:[#allocation27_spill] sm:$0xff] %v3562_v31  ;;  %v1061_v32 = vpop.permute.xlu0 %1060  ;;  %v3564_v35 = vmov 0 }
 0x127   : > { %v2096_v38 = vpop.f32.mrf.mxu0  ;;  %2122 = vmatmul.mubr.bf16.vlgmr.msra.gmra.mxu1 %v839_v36  ;;  %v3565_v35 = vsel %vm2756_vm14, 4294967295, %v3564_v35  ;;  %vm1095_vm8 = vcmp.eq.s32.totalorder %v1061_v32, 1 }
 0x128   : > { %v803_v39 = vadd.f32 %v2096_v38, %v2006_v28  ;;  %3566 = vst [vmem:[#allocation28_spill] sm:$0xff] %v3565_v35  ;;  %vm2788_vm12 = vmand %vm1095_vm8, %vm1110_vm15 }
 0x129   : > { %v794_v40 = vpop.f32.mrf.mxu0 }
 0x12a   : > { %v795_v42 = vadd.f32 %v2006_v28, %v794_v40  ;;  %v841_v46 = vpack.c.bf16 %v803_v39, %v800_v43  ;;  %v1067_v38 = vpop.permute.xlu0 %1066  ;;  %v3570_v43 = vmov 0 }
 0x12b   : > { %v2099_v44 = vpop.f32.mrf.mxu0 }
 0x12c   : > { %v840_v45 = vpack.c.bf16 %v795_v42, %v792_v41  ;;  %v816_v53 = vadd.f32 %v2099_v44, %v2006_v28  ;;  %v3567_v41 = vmov 0 }
 0x12d   : > { %v807_v47 = vpop.f32.mrf.mxu0  ;;  %v3568_v41 = vsel %vm2767_vm10, 4294967295, %v3567_v41 }
 0x12e   : > { %2125 = vmatprep.mubr.bf16.mxu1 %v840_v45  ;;  %v808_v51 = vadd.f32 %v2006_v28, %v807_v47  ;;  %3569 = vst [vmem:[#allocation29_spill] sm:$0xff] %v3568_v41  ;;  %v3573_v47 = vmov 0 }
 0x12f   : > { %v2100_v48 = vpop.f32.mrf.mxu0  ;;  %2126 = vmatmul.mubr.bf16.gmra.mxu1 %v841_v46  ;;  %v3574_v47 = vsel %vm2788_vm12, 4294967295, %v3573_v47 }
 0x130   : > { %v819_v49 = vadd.f32 %v2100_v48, %v2006_v28  ;;  %3575 = vst [vmem:[#allocation31_spill] sm:$0xff] %v3574_v47 }
 0x131   : > { %v810_v50 = vpop.f32.mrf.mxu0 }
 0x132   : > { %v811_v52 = vadd.f32 %v2006_v28, %v810_v50  ;;  %v843_v61 = vpack.c.bf16 %v819_v49, %v816_v53  ;;  %v1073_v49 = vpop.permute.xlu0 %1072 }
 0x133   : > { %v2103_v54 = vpop.f32.mrf.mxu0  ;;  %vm1099_vm3 = vcmp.eq.s32.totalorder %v1073_v49, 1 }
 0x134   : > { %v842_v55 = vpack.c.bf16 %v811_v52, %v808_v51  ;;  %v832_v10 = vadd.f32 %v2103_v54, %v2006_v28  ;;  %v3576_v52 = vmov 0  ;;  %v3579_v54 = vmov 0  ;;  %vm2832_vm7 = vmand %vm1099_vm3, %vm1110_vm15 }
 0x135   : > { %v823_v62 = vpop.f32.mrf.mxu0 }
 0x136   : > { %2129 = vmatprep.mubr.bf16.mxu1 %v842_v55  ;;  %v824_v6 = vadd.f32 %v2006_v28, %v823_v62 }
 0x137   : > { %v2104_v1 = vpop.f32.mrf.mxu0  ;;  %2130 = vmatmul.mubr.bf16.gmra.mxu1 %v843_v61 }
 0x138   : > { %v835_v2 = vadd.f32 %v2104_v1, %v2006_v28  ;;  %v3582_v1 = vmov 0 }
 0x139   : > { %v826_v5 = vpop.f32.mrf.mxu0 }
 0x13a   : > { %v827_v9 = vadd.f32 %v2006_v28, %v826_v5  ;;  %v845_v14 = vpack.c.bf16 %v835_v2, %v832_v10  ;;  %v1052_v28 = vpop.permute.xlu1 %1051  ;;  %v1079_v5 = vpop.permute.xlu0 %1078 }
 0x13b   : > { %vm1092_vm9 = vcmp.eq.s32.totalorder %v1052_v28, 1  ;;  %vm1101_vm0 = vcmp.eq.s32.totalorder %v1079_v5, 1 }
 0x13c   : > { %v844_v13 = vpack.c.bf16 %v827_v9, %v824_v6  ;;  %vm2777_vm11 = vmand %vm1092_vm9, %vm1110_vm15  ;;  %vm1093_vm9 = vcmp.eq.s32.totalorder %v1055_v29, 1  ;;  %v3585_v9 = vmov 0  ;;  %v3594_v29 = vmov 0 }
 0x13d   : > { %v3571_v43 = vsel %vm2777_vm11, 4294967295, %v3570_v43  ;;  %vm2810_vm5 = vmand %vm1093_vm9, %vm1110_vm15  ;;  %v3586_v9 = vsel %vm2832_vm7, 4294967295, %v3585_v9 }
 0x13e   : > { %2133 = vmatprep.mubr.bf16.mxu1 %v844_v13  ;;  %v1058_v30 = vpop.permute.xlu1 %1057  ;;  %3572 = vst [vmem:[#allocation30_spill] sm:$0xff] %v3571_v43  ;;  %v3580_v54 = vsel %vm2810_vm5, 4294967295, %v3579_v54  ;;  %3587 = vst [vmem:[#allocation35_spill] sm:$0xff] %v3586_v9  ;;  %v1085_v26 = vpop.permute.xlu0 %1084 }
 0x13f   : > { %2134 = vmatmul.mubr.bf16.gmra.mxu1 %v845_v14  ;;  %vm1094_vm8 = vcmp.eq.s32.totalorder %v1058_v30, 1  ;;  %3581 = vst [vmem:[#allocation33_spill] sm:$0xff] %v3580_v54 }
 0x142   : > { %v1064_v36 = vpop.permute.xlu1 %1063 }
 0x143   : > { %vm1096_vm4 = vcmp.eq.s32.totalorder %v1064_v36, 1 }
 0x144   : > { %vm2800_vm6 = vmand %vm1096_vm4, %vm1110_vm15 }
 0x145   : > { %v3577_v52 = vsel %vm2800_vm6, 4294967295, %v3576_v52  ;;  %vm2821_vm4 = vmand %vm1094_vm8, %vm1110_vm15  ;;  %vm1097_vm8 = vcmp.eq.s32.totalorder %v1067_v38, 1 }
 0x146   : > { %v1070_v46 = vpop.permute.xlu1 %1069  ;;  %3578 = vst [vmem:[#allocation32_spill] sm:$0xff] %v3577_v52  ;;  %v3583_v1 = vsel %vm2821_vm4, 4294967295, %v3582_v1  ;;  %vm2854_vm1 = vmand %vm1097_vm8, %vm1110_vm15  ;;  %vm1103_vm8 = vcmp.eq.s32.totalorder %v1085_v26, 1 }
 0x147   : > { %3584 = vst [vmem:[#allocation34_spill] sm:$0xff] %v3583_v1  ;;  %vm1098_vm3 = vcmp.eq.s32.totalorder %v1070_v46, 1  ;;  %v3592_v24 = vsel %vm2854_vm1, 4294967295, %v3591_v24  ;;  %v3603_v46 = vmov 0 }
 0x148   : > { %3593 = vst [vmem:[#allocation37_spill] sm:$0xff] %v3592_v24 }
 0x14a   : > { %v1076_v62 = vpop.permute.xlu1 %1075 }
 0x14b   : > { %vm1100_vm9 = vcmp.eq.s32.totalorder %v1076_v62, 1  ;;  %v2920_v62 = vand.u32 127, %v1106_v17 }
 0x14c   : > { %vm2844_vm2 = vmand %vm1100_vm9, %vm1110_vm15 }
 0x14d   : > { %v3589_v18 = vsel %vm2844_vm2, 4294967295, %v3588_v18  ;;  %vm2865_vm9 = vmand %vm1098_vm3, %vm1110_vm15  ;;  %3610 = vst [vmem:[#allocation44_spill] sm:$0xff] %v2920_v62 }
 0x14e   : > { %3590 = vst [vmem:[#allocation36_spill] sm:$0xff] %v3589_v18  ;;  %v1082_v23 = vpop.permute.xlu1 %1081  ;;  %v3595_v29 = vsel %vm2865_vm9, 4294967295, %v3594_v29 }
 0x14f   : > { %3596 = vst [vmem:[#allocation38_spill] sm:$0xff] %v3595_v29  ;;  %vm1102_vm3 = vcmp.eq.s32.totalorder %v1082_v23, 1 }
 0x1e7   : > { %v2123_v33 = vpop.f32.mrf.mxu1 }
 0x1e8   : > { %v2751_v56 = vsel %vm2745_vm13, %v2123_v33, -1e+30 }
 0x1e9   : > { %1147 = vmax.xlane.f32.xlu0 %v2751_v56  ;;  %v928_v34 = vpop.f32.mrf.mxu1 }
 0x1ea   : > { %v2762_v39 = vsel %vm2756_vm14, %v928_v34, -1e+30  ;;  %v3597_v34 = vmov 0 }
 0x1eb   : > { %v2124_v37 = vpop.f32.mrf.mxu1 }
 0x1ec   : > { %v2784_v45 = vsel %vm2777_vm11, %v2124_v37, -1e+30  ;;  %v1088_v37 = vpop.permute.xlu1 %1087 }
 0x1ed   : > { %1143 = vmax.xlane.f32.xlu0 %v2762_v39  ;;  %v931_v40 = vpop.f32.mrf.mxu1 }
 0x1ee   : > { %v2773_v42 = vsel %vm2767_vm10, %v931_v40, -1e+30  ;;  %v3600_v40 = vmov 0 }
 0x1ef   : > { %1145 = vmax.xlane.f32.xlu1 %v2773_v42  ;;  %v2127_v44 = vpop.f32.mrf.mxu1 }
 0x1f0   : > { %v2795_v50 = vsel %vm2788_vm12, %v2127_v44, -1e+30 }
 0x1f1   : > { %1149 = vmax.xlane.f32.xlu0 %v2784_v45  ;;  %v944_v48 = vpop.f32.mrf.mxu1 }
 0x1f2   : > { %v2817_v61 = vsel %vm2810_vm5, %v944_v48, -1e+30 }
 0x1f3   : > { %1155 = vmax.xlane.f32.xlu1 %v2795_v50  ;;  %v2128_v51 = vpop.f32.mrf.mxu1 }
 0x1f4   : > { %v2806_v53 = vsel %vm2800_vm6, %v2128_v51, -1e+30  ;;  %v3607_v51 = vmov 0 }
 0x1f5   : > { %1157 = vmax.xlane.f32.xlu0 %v2806_v53  ;;  %v947_v55 = vpop.f32.mrf.mxu1 }
 0x1f6   : > { %v2828_v6 = vsel %vm2821_vm4, %v947_v55, -1e+30 }
 0x1f7   : > { %1151 = vmax.xlane.f32.xlu1 %v2817_v61  ;;  %v2131_v2 = vpop.f32.mrf.mxu1 }
 0x1f8   : > { %v2839_v13 = vsel %vm2832_vm7, %v2131_v2, -1e+30  ;;  %vm2877_vm7 = vmand %vm1101_vm0, %vm1110_vm15 }
 0x1f9   : > { %1153 = vmax.xlane.f32.xlu0 %v2828_v6  ;;  %v960_v10 = vpop.f32.mrf.mxu1  ;;  %v3598_v34 = vsel %vm2877_vm7, 4294967295, %v3597_v34  ;;  %vm2894_vm0 = vmand %vm1102_vm3, %vm1110_vm15 }
 0x1fa   : > { %v2861_v28 = vsel %vm2854_vm1, %v960_v10, -1e+30  ;;  %3599 = vst [vmem:[#allocation39_spill] sm:$0xff] %v3598_v34  ;;  %vm2888_vm1 = vmand %vm1103_vm8, %vm1110_vm15  ;;  %v3604_v46 = vsel %vm2894_vm0, 4294967295, %v3603_v46 }
 0x1fb   : > { %1163 = vmax.xlane.f32.xlu1 %v2839_v13  ;;  %v2132_v14 = vpop.f32.mrf.mxu1  ;;  %v3601_v40 = vsel %vm2888_vm1, 4294967295, %v3600_v40  ;;  %3605 = vst [vmem:[#allocation41_spill] sm:$0xff] %v3604_v46 }
 0x1fc   : > { %v2850_v21 = vsel %vm2844_vm2, %v2132_v14, -1e+30  ;;  %3602 = vst [vmem:[#allocation40_spill] sm:$0xff] %v3601_v40  ;;  %vm1104_vm2 = vcmp.eq.s32.totalorder %v1088_v37, 1 }
 0x1fd   : > { %1165 = vmax.xlane.f32.xlu0 %v2850_v21  ;;  %v963_v25 = vpop.f32.mrf.mxu1  ;;  %vm2910_vm8 = vmand %vm1104_vm2, %vm1110_vm15 }
 0x1fe   : > { %v2872_v32 = vsel %vm2865_vm9, %v963_v25, -1e+30  ;;  %v3608_v51 = vsel %vm2910_vm8, 4294967295, %v3607_v51 }
 0x1ff   : > { %1159 = vmax.xlane.f32.xlu1 %v2861_v28  ;;  %v2135_v30 = vpop.f32.mrf.mxu1  ;;  %3609 = vst [vmem:[#allocation43_spill] sm:$0xff] %v3608_v51 }
 0x200   : > { %v2900_v48 = vsel %vm2888_vm1, %v2135_v30, -1e+30 }
 0x201   : > { %1161 = vmax.xlane.f32.xlu0 %v2872_v32  ;;  %v976_v33 = vpop.f32.mrf.mxu1  ;;  %3606 = vst [vmem:[#allocation42_spill] sm:$0xff] %v2900_v48 }
 0x202   : > { %v2883_v36 = vsel %vm2877_vm7, %v976_v33, -1e+30 }
 0x203   : > { %1167 = vmax.xlane.f32.xlu1 %v2883_v36  ;;  %v2136_v38 = vpop.f32.mrf.mxu1 }
 0x204   : > { %v2916_v55 = vsel %vm2910_vm8, %v2136_v38, -1e+30 }
 0x205   : > { %v979_v44 = vpop.f32.mrf.mxu1 }
 0x206   : > { %v2904_v49 = vsel %vm2894_vm0, %v979_v44, -1e+30 }
 0x207   : > { %1171 = vmax.xlane.f32.xlu1 %v2900_v48  ;;  %1169 = vmax.xlane.f32.xlu0 %v2904_v49 }
 0x20b   : > { %1173 = vmax.xlane.f32.xlu0 %v2916_v55 }
 0x272   : > { %v2922_v2 = vpop.xlane.xlu0 %1147 }
 0x273   : > { %vm1179_vm3 = vcmp.eq.f32.partialorder %v2751_v56, %v2922_v2  ;;  %v3058_v60 = vsub.f32 %v2751_v56, %v2922_v2 }
 0x274   : > { %v2927_v27 = vsel %vm1179_vm3, %v2920_v62, 128 }
 0x275   : > { %v1238_v5 = vshra.s32 %v2927_v27, 16  ;;  %3614 = vst [vmem:[#allocation48_spill] sm:$0xff] %v3058_v60  ;;  %v1643_v31 = vmul.f32 1.442695, %v3058_v60 }
 0x276   : > { %v1144_v10 = vpop.xlane.xlu0 %1143 }
 0x277   : > { %vm1177_vm2 = vcmp.eq.f32.partialorder %v2762_v39, %v1144_v10  ;;  %v2931_v14 = vcvt.s32.f32 %v1238_v5 }
 0x278   : > { %v2934_v23 = vsel %vm1177_vm2, %v2920_v62, 128  ;;  %v1146_v17 = vpop.xlane.xlu1 %1145 }
 0x279   : > { %1241 = vmin.xlane.f32.xlu1 %v2931_v14  ;;  %v1210_v25 = vshra.s32 %v2934_v23, 16  ;;  %vm1178_vm15 = vcmp.eq.f32.partialorder %v2773_v42, %v1146_v17  ;;  %v3034_v12 = vsub.f32 %v2773_v42, %v1146_v17 }
 0x27a   : > { %v1150_v26 = vpop.xlane.xlu0 %1149  ;;  %v2948_v38 = vsel %vm1178_vm15, %v2920_v62, 128 }
 0x27b   : > { %vm1180_vm3 = vcmp.eq.f32.partialorder %v2784_v45, %v1150_v26  ;;  %v2945_v37 = vcvt.s32.f32 %v1210_v25  ;;  %v1224_v51 = vshra.s32 %v2948_v38, 16  ;;  %v3021_v7 = vsub.f32 %v2784_v45, %v1150_v26  ;;  %3613 = vst [vmem:[#allocation47_spill] sm:$0xff] %v3034_v12 }
 0x27c   : > { %v2941_v30 = vsel %vm1180_vm3, %v2920_v62, 128  ;;  %v2943_v33 = vpop.xlane.xlu1 %1155  ;;  %v1641_v4 = vmul.f32 1.442695, %v3034_v12 }
 0x27d   : > { %vm1183_vm2 = vcmp.eq.f32.partialorder %v2795_v50, %v2943_v33  ;;  %1213 = vmin.xlane.f32.xlu1 %v2945_v37  ;;  %v1252_v22 = vshra.s32 %v2941_v30, 16  ;;  %v2985_v47 = vcvt.s32.f32 %v1224_v51  ;;  %3612 = vst [vmem:[#allocation46_spill] sm:$0xff] %v3021_v7  ;;  %v1645_v42 = vmul.f32 1.442695, %v3021_v7 }
 0x27e   : > { %v2953_v44 = vsel %vm1183_vm2, %v2920_v62, 128  ;;  %v2956_v5 = vpop.xlane.xlu0 %1157 }
 0x27f   : > { %vm1184_vm3 = vcmp.eq.f32.partialorder %v2806_v53, %v2956_v5  ;;  %v2963_v40 = vcvt.s32.f32 %v1252_v22  ;;  %v1294_v34 = vshra.s32 %v2953_v44, 16 }
 0x280   : > { %v2961_v25 = vpop.xlane.xlu1 %1151  ;;  %v2968_v9 = vsel %vm1184_vm3, %v2920_v62, 128 }
 0x281   : > { %vm1181_vm15 = vcmp.eq.f32.partialorder %v2817_v61, %v2961_v25  ;;  %1255 = vmin.xlane.f32.xlu0 %v2963_v40  ;;  %v2978_v18 = vcvt.s32.f32 %v1294_v34  ;;  %v1308_v54 = vshra.s32 %v2968_v9, 16  ;;  %v2995_v34 = vsub.f32 %v2762_v39, %v1144_v10 }
 0x282   : > { %v2973_v46 = vsel %vm1181_vm15, %v2920_v62, 128  ;;  %v2976_v24 = vpop.xlane.xlu0 %1153 }
 0x283   : > { %vm1182_vm2 = vcmp.eq.f32.partialorder %v2828_v6, %v2976_v24  ;;  %1297 = vmin.xlane.f32.xlu1 %v2978_v18  ;;  %v1266_v29 = vshra.s32 %v2973_v46, 16  ;;  %3611 = vst [vmem:[#allocation45_spill] sm:$0xff] %v2995_v34  ;;  %v3010_v20 = vcvt.s32.f32 %v1308_v54 }
 0x284   : > { %v2983_v22 = vpop.xlane.xlu1 %1163  ;;  %v2990_v52 = vsel %vm1182_vm2, %v2920_v62, 128 }
 0x285   : > { %vm1187_vm3 = vcmp.eq.f32.partialorder %v2839_v13, %v2983_v22  ;;  %1227 = vmin.xlane.f32.xlu0 %v2985_v47  ;;  %v3003_v19 = vcvt.s32.f32 %v1266_v29  ;;  %v1280_v10 = vshra.s32 %v2990_v52, 16  ;;  %v1639_v29 = vmul.f32 1.442695, %v2995_v34 }
 0x286   : > { %v2998_v1 = vsel %vm1187_vm3, %v2920_v62, 128  ;;  %v3001_v51 = vpop.xlane.xlu0 %1165 }
 0x287   : > { %vm1188_vm15 = vcmp.eq.f32.partialorder %v2850_v21, %v3001_v51  ;;  %1269 = vmin.xlane.f32.xlu1 %v3003_v19  ;;  %v1350_v39 = vshra.s32 %v2998_v1, 16  ;;  %v3039_v45 = vcvt.s32.f32 %v1280_v10  ;;  %2226 = vpow2.f32 %v1639_v29 }
 0x288   : > { %v3008_v15 = vpop.xlane.xlu1 %1159  ;;  %v3015_v16 = vsel %vm1188_vm15, %v2920_v62, 128  ;;  %2228 = vpow2.f32 %v1645_v42 }
 0x289   : > { %vm1185_vm2 = vcmp.eq.f32.partialorder %v2861_v28, %v3008_v15  ;;  %1311 = vmin.xlane.f32.xlu0 %v3010_v20  ;;  %v3029_v11 = vcvt.s32.f32 %v1350_v39  ;;  %v1364_v3 = vshra.s32 %v3015_v16, 16  ;;  %2230 = vpow2.f32 %v1641_v4 }
 0x28a   : > { %v3024_v8 = vsel %vm1185_vm2, %v2920_v62, 128  ;;  %v3027_v54 = vpop.xlane.xlu0 %1161  ;;  %2232 = vpow2.f32 %v1643_v31  ;;  %v1237_v31 = vand.u32 65535, %v2927_v27 }
 0x28b   : > { %vm1186_vm3 = vcmp.eq.f32.partialorder %v2872_v32, %v3027_v54  ;;  %1353 = vmin.xlane.f32.xlu1 %v3029_v11  ;;  %v1322_v26 = vshra.s32 %v3024_v8, 16  ;;  %v3066_v58 = vcvt.s32.f32 %v1364_v3 }
 0x28c   : > { %v3037_v63 = vpop.xlane.xlu1 %1167  ;;  %v3044_v0 = vsel %vm1186_vm3, %v2920_v62, 128  ;;  %v1239_v34 = vcvt.s32.f32 %v1237_v31 }
 0x28d   : > { %vm1189_vm15 = vcmp.eq.f32.partialorder %v2883_v36, %v3037_v63  ;;  %1283 = vmin.xlane.f32.xlu0 %v3039_v45  ;;  %v3053_v39 = vcvt.s32.f32 %v1322_v26  ;;  %v1336_v57 = vshra.s32 %v3044_v0, 16 }
 0x28e   : > { %v3050_v17 = vsel %vm1189_vm15, %v2920_v62, 128 }
 0x28f   : > { %v1378_v10 = vshra.s32 %v3050_v17, 16  ;;  %1325 = vmin.xlane.f32.xlu1 %v3053_v39  ;;  %v3087_v42 = vcvt.s32.f32 %v1336_v57 }
 0x290   : > { %v3062_v29 = vpop.xlane.xlu1 %1171  ;;  %v3064_v59 = vpop.xlane.xlu0 %1169 }
 0x291   : > { %3615 = vst [vmem:[#allocation49_spill] sm:$0xff] %v3062_v29  ;;  %vm1191_vm2 = vcmp.eq.f32.partialorder %v2900_v48, %v3062_v29  ;;  %vm1190_vm3 = vcmp.eq.f32.partialorder %v2904_v49, %v3064_v59  ;;  %1367 = vmin.xlane.f32.xlu0 %v3066_v58  ;;  %v3080_v26 = vcvt.s32.f32 %v1378_v10 }
 0x292   : > { %v3074_v56 = vsel %vm1191_vm2, %v2920_v62, 128  ;;  %v3077_v2 = vsel %vm1190_vm3, %v2920_v62, 128 }
 0x293   : > { %v1406_v3 = vshra.s32 %v3074_v56, 16  ;;  %1381 = vmin.xlane.f32.xlu1 %v3080_v26  ;;  %v1392_v12 = vshra.s32 %v3077_v2, 16 }
 0x294   : > { %v3085_v41 = vpop.xlane.xlu0 %1173  ;;  %v2227_v60 = vpop.eup %2226 }
 0x295   : > { %vm1192_vm15 = vcmp.eq.f32.partialorder %v2916_v55, %v3085_v41  ;;  %v3092_v43 = vcvt.s32.f32 %v1406_v3  ;;  %1339 = vmin.xlane.f32.xlu0 %v3087_v42  ;;  %v3099_v4 = vcvt.s32.f32 %v1392_v12  ;;  %v2229_v3 = vpop.eup %2228 }
 0x296   : > { %v3095_v10 = vsel %vm1192_vm15, %v2920_v62, 128  ;;  %v2231_v62 = vpop.eup %2230 }
 0x297   : > { %1409 = vmin.xlane.f32.xlu1 %v3092_v43  ;;  %v1420_v57 = vshra.s32 %v3095_v10, 16  ;;  %v2233_v35 = vpop.eup %2232 }
 0x299   : > { %1395 = vmin.xlane.f32.xlu0 %v3099_v4  ;;  %v3103_v7 = vcvt.s32.f32 %v1420_v57 }
 0x29b   : > { %1671 = vadd.xlane.f32.xlu1 %v2227_v60  ;;  %v1209_v60 = vand.u32 65535, %v2934_v23 }
 0x29d   : > { %1423 = vmin.xlane.f32.xlu0 %v3103_v7  ;;  %v1211_v29 = vcvt.s32.f32 %v1209_v60 }
 0x29f   : > { %1677 = vadd.xlane.f32.xlu1 %v2229_v3  ;;  %v1251_v3 = vand.u32 65535, %v2941_v30  ;;  %v1265_v30 = vand.u32 65535, %v2973_v46  ;;  %v1349_v46 = vand.u32 65535, %v2998_v1  ;;  %v1321_v1 = vand.u32 65535, %v3024_v8 }
 0x2a1   : > { %1673 = vadd.xlane.f32.xlu0 %v2231_v62  ;;  %v1293_v62 = vand.u32 65535, %v2953_v44  ;;  %v1253_v31 = vcvt.s32.f32 %v1251_v3  ;;  %v1267_v3 = vcvt.s32.f32 %v1265_v30 }
 0x2a3   : > { %v1295_v60 = vcvt.s32.f32 %v1293_v62 }
 0x2a5   : > { %1675 = vadd.xlane.f32.xlu0 %v2233_v35 }
 0x302   : > { %v3107_v12 = vpop.xlane.xlu1 %1241 }
 0x303   : > { %vm1243_vm2 = vcmp.eq.f32.partialorder %v2931_v14, %v3107_v12  ;;  %v1223_v14 = vand.u32 65535, %v2948_v38 }
 0x304   : > { %v1244_v57 = vsel %vm1243_vm2, %v1239_v34, inf }
 0x305   : > { %1245 = vmin.xlane.f32.xlu1 %v1244_v57  ;;  %v1307_v57 = vand.u32 65535, %v2968_v9  ;;  %v1279_v9 = vand.u32 65535, %v2990_v52 }
 0x306   : > { %v3112_v48 = vpop.xlane.xlu1 %1213 }
 0x307   : > { %vm1215_vm3 = vcmp.eq.f32.partialorder %v2945_v37, %v3112_v48  ;;  %v1309_v62 = vcvt.s32.f32 %v1307_v57  ;;  %v3171_v57 = vsub.f32 %v2817_v61, %v2961_v25  ;;  %v3187_v25 = vsub.f32 %v2795_v50, %v2943_v33 }
 0x308   : > { %v1216_v35 = vsel %vm1215_vm3, %v1211_v29, inf  ;;  %v1225_v29 = vcvt.s32.f32 %v1223_v14  ;;  %v1351_v14 = vcvt.s32.f32 %v1349_v46  ;;  %v3204_v50 = vsub.f32 %v2861_v28, %v3008_v15 }
 0x309   : > { %1217 = vmin.xlane.f32.xlu1 %v1216_v35  ;;  %v3215_v15 = vsub.f32 %v2839_v13, %v2983_v22  ;;  %v3219_v28 = vsub.f32 %v2904_v49, %v3064_v59  ;;  %v3230_v49 = vsub.f32 %v2916_v55, %v3085_v41 }
 0x30a   : > { %v3118_v27 = vpop.xlane.xlu0 %1255 }
 0x30b   : > { %vm1257_vm15 = vcmp.eq.f32.partialorder %v2963_v40, %v3118_v27  ;;  %v1665_v59 = vmul.f32 1.442695, %v3219_v28  ;;  %v1669_v41 = vmul.f32 1.442695, %v3230_v49 }
 0x30c   : > { %v3123_v23 = vpop.xlane.xlu1 %1297  ;;  %v1258_v34 = vsel %vm1257_vm15, %v1253_v31, inf }
 0x30d   : > { %1259 = vmin.xlane.f32.xlu0 %v1258_v34  ;;  %vm1299_vm2 = vcmp.eq.f32.partialorder %v2978_v18, %v3123_v23  ;;  %v3148_v34 = vsub.f32 %v2828_v6, %v2976_v24  ;;  %v3161_v6 = vsub.f32 %v2806_v53, %v2956_v5  ;;  %v3177_v53 = vsub.f32 %v2872_v32, %v3027_v54 }
 0x30e   : > { %v3128_v37 = vpop.xlane.xlu0 %1227  ;;  %v1300_v44 = vsel %vm1299_vm2, %v1295_v60, inf  ;;  %v1281_v60 = vcvt.s32.f32 %v1279_v9  ;;  %v3192_v32 = vsub.f32 %v2850_v21, %v3001_v51  ;;  %v1419_v51 = vand.u32 65535, %v3095_v10 }
 0x30f   : > { %1301 = vmin.xlane.f32.xlu1 %v1300_v44  ;;  %vm1229_vm3 = vcmp.eq.f32.partialorder %v2985_v47, %v3128_v37  ;;  %v1323_v44 = vcvt.s32.f32 %v1321_v1  ;;  %v1657_v54 = vmul.f32 1.442695, %v3177_v53  ;;  %v1655_v10 = vmul.f32 1.442695, %v3204_v50 }
 0x310   : > { %v3133_v40 = vpop.xlane.xlu1 %1269  ;;  %v1230_v38 = vsel %vm1229_vm3, %v1225_v29, inf  ;;  %v1391_v1 = vand.u32 65535, %v3077_v2 }
 0x311   : > { %1231 = vmin.xlane.f32.xlu0 %v1230_v38  ;;  %vm1271_vm15 = vcmp.eq.f32.partialorder %v3003_v19, %v3133_v40  ;;  %v1405_v38 = vand.u32 65535, %v3074_v56 }
 0x312   : > { %v3138_v18 = vpop.xlane.xlu0 %1311  ;;  %v1272_v35 = vsel %vm1271_vm15, %v1267_v3, inf  ;;  %v1653_v3 = vmul.f32 1.442695, %v3161_v6 }
 0x313   : > { %1273 = vmin.xlane.f32.xlu1 %v1272_v35  ;;  %vm1313_vm2 = vcmp.eq.f32.partialorder %v3010_v20, %v3138_v18  ;;  %v1363_v20 = vand.u32 65535, %v3015_v16  ;;  %v1407_v35 = vcvt.s32.f32 %v1405_v38 }
 0x314   : > { %v3143_v47 = vpop.xlane.xlu1 %1353  ;;  %v1314_v31 = vsel %vm1313_vm2, %v1309_v62, inf  ;;  %v1377_v62 = vand.u32 65535, %v3050_v17  ;;  %v1661_v17 = vmul.f32 1.442695, %v3192_v32 }
 0x315   : > { %1315 = vmin.xlane.f32.xlu0 %v1314_v31  ;;  %vm1355_vm3 = vcmp.eq.f32.partialorder %v3029_v11, %v3143_v47  ;;  %v1649_v11 = vmul.f32 1.442695, %v3148_v34  ;;  %v1365_v29 = vcvt.s32.f32 %v1363_v20  ;;  %v3237_v20 = vsub.f32 %v2883_v36, %v3037_v63 }
 0x316   : > { %v3152_v19 = vpop.xlane.xlu0 %1283  ;;  %v1356_v52 = vsel %vm1355_vm3, %v1351_v14, inf  ;;  %v1379_v9 = vcvt.s32.f32 %v1377_v62 }
 0x317   : > { %1357 = vmin.xlane.f32.xlu1 %v1356_v52  ;;  %vm1285_vm15 = vcmp.eq.f32.partialorder %v3039_v45, %v3152_v19  ;;  %v1335_v45 = vand.u32 65535, %v3044_v0  ;;  %2234 = vpow2.f32 %v1649_v11  ;;  %v1659_v52 = vmul.f32 1.442695, %v3215_v15  ;;  %v3616_v11 = vld [vmem:[#allocation49_spill] sm:$0xff] }
 0x318   : > { %v3157_v30 = vpop.xlane.xlu1 %1325  ;;  %v1286_v8 = vsel %vm1285_vm15, %v1281_v60, inf  ;;  %2236 = vpow2.f32 %v1653_v3 }
 0x319   : > { %1287 = vmin.xlane.f32.xlu0 %v1286_v8  ;;  %vm1327_vm2 = vcmp.eq.f32.partialorder %v3053_v39, %v3157_v30  ;;  %v1337_v61 = vcvt.s32.f32 %v1335_v45 }
 0x31a   : > { %v3166_v24 = vpop.xlane.xlu0 %1367  ;;  %v1328_v16 = vsel %vm1327_vm2, %v1323_v44, inf  ;;  %v1663_v44 = vmul.f32 1.442695, %v3237_v20 }
 0x31b   : > { %1329 = vmin.xlane.f32.xlu1 %v1328_v16  ;;  %vm1369_vm3 = vcmp.eq.f32.partialorder %v3066_v58, %v3166_v24  ;;  %v1647_v58 = vmul.f32 1.442695, %v3171_v57  ;;  %v3617_v16 = vld [vmem:[#allocation42_spill] sm:$0xff] }
 0x31c   : > { %v3179_v5 = vpop.xlane.xlu1 %1381  ;;  %v1370_v39 = vsel %vm1369_vm3, %v1365_v29, inf  ;;  %v3243_v29 = vsub.f32 %v3617_v16, %v3616_v11  ;;  %v1248_v16 = vcvt.f32.s32 %v3107_v12 }
 0x31d   : > { %1371 = vmin.xlane.f32.xlu0 %v1370_v39  ;;  %2238 = vpow2.f32 %v1647_v58  ;;  %vm1383_vm3 = vcmp.eq.f32.partialorder %v3080_v26, %v3179_v5  ;;  %v1421_v26 = vcvt.s32.f32 %v1419_v51  ;;  %v3618_v58 = vld [vmem:[#allocation45_spill] sm:$0xff] }
 0x31e   : > { %v3183_v0 = vpop.xlane.xlu0 %1339  ;;  %2240 = vpow2.f32 %v1657_v54  ;;  %v1384_v14 = vsel %vm1383_vm3, %v1379_v9, inf  ;;  %v1667_v39 = vmul.f32 1.442695, %v3243_v29 }
 0x31f   : > { %vm1341_vm15 = vcmp.eq.f32.partialorder %v3087_v42, %v3183_v0  ;;  %v1651_v42 = vmul.f32 1.442695, %v3187_v25 }
 0x320   : > { %v3197_v56 = vpop.xlane.xlu1 %1409  ;;  %v1342_v46 = vsel %vm1341_vm15, %v1337_v61, inf }
 0x321   : > { %1343 = vmin.xlane.f32.xlu0 %v1342_v46  ;;  %vm1411_vm2 = vcmp.eq.f32.partialorder %v3092_v43, %v3197_v56 }
 0x322   : > { %v3206_v21 = vpop.xlane.xlu0 %1395  ;;  %v1412_v33 = vsel %vm1411_vm2, %v1407_v35, inf }
 0x323   : > { %1413 = vmin.xlane.f32.xlu1 %v1412_v33  ;;  %vm1397_vm2 = vcmp.eq.f32.partialorder %v3099_v4, %v3206_v21 }
 0x324   : > { %v1672_v43 = vpop.xlane.xlu1 %1671  ;;  %v2235_v2 = vpop.eup %2234 }
 0x325   : > { %2242 = vlog2.f32 %v1672_v43  ;;  %v2237_v55 = vpop.eup %2236 }
 0x326   : > { %v3222_v31 = vpop.xlane.xlu0 %1423  ;;  %2244 = vpow2.f32 %v1651_v42 }
 0x327   : > { %1385 = vmin.xlane.f32.xlu1 %v1384_v14  ;;  %vm1425_vm15 = vcmp.eq.f32.partialorder %v3103_v7, %v3222_v31  ;;  %2246 = vpow2.f32 %v1661_v17  ;;  %v1393_v7 = vcvt.s32.f32 %v1391_v1  ;;  %v3620_v17 = vld [vmem:[#allocation46_spill] sm:$0xff] }
 0x328   : > { %v1678_v13 = vpop.xlane.xlu1 %1677  ;;  %v1426_v22 = vsel %vm1425_vm15, %v1421_v26, inf }
 0x329   : > { %2248 = vlog2.f32 %v1678_v13  ;;  %1427 = vmin.xlane.f32.xlu0 %v1426_v22  ;;  %v1398_v8 = vsel %vm1397_vm2, %v1393_v7, inf  ;;  %v3622_v13 = vld [vmem:[#allocation47_spill] sm:$0xff] }
 0x32a   : > { %2250 = vpow2.f32 %v1655_v10  ;;  %v1674_v60 = vpop.xlane.xlu0 %1673  ;;  %v2239_v63 = vpop.eup %2238 }
 0x32b   : > { %2252 = vlog2.f32 %v1674_v60  ;;  %1681 = vadd.xlane.f32.xlu1 %v2235_v2  ;;  %v2241_v36 = vpop.eup %2240 }
 0x32c   : > { %2254 = vpow2.f32 %v1665_v59 }
 0x32d   : > { %1399 = vmin.xlane.f32.xlu0 %v1398_v8  ;;  %2256 = vpow2.f32 %v1659_v52  ;;  %v3624_v8 = vld [vmem:[#allocation48_spill] sm:$0xff] }
 0x32e   : > { %v1676_v4 = vpop.xlane.xlu0 %1675 }
 0x32f   : > { %2258 = vlog2.f32 %v1676_v4  ;;  %1685 = vadd.xlane.f32.xlu1 %v2237_v55 }
 0x330   : > { %2260 = vpow2.f32 %v1669_v41 }
 0x331   : > { %1679 = vadd.xlane.f32.xlu0 %v2239_v63  ;;  %2262 = vpow2.f32 %v1663_v44 }
 0x332   : > { %v2243_v45 = vpop.eup %2242  ;;  %2264 = vpow2.f32 %v1667_v39  ;;  %v1220_v39 = vcvt.f32.s32 %v3112_v48 }
 0x333   : > { %v1704_v38 = vmul.f32 0.6931472, %v2243_v45  ;;  %1689 = vadd.xlane.f32.xlu1 %v2241_v36  ;;  %v2245_v3 = vpop.eup %2244  ;;  %v1249_v36 = vshll.u32 %v1248_v16, 16 }
 0x334   : > { %v2247_v61 = vpop.eup %2246 }
 0x335   : > { %v1735_v54 = vsub.f32 %v3618_v58, %v1704_v38  ;;  %1683 = vadd.xlane.f32.xlu0 %v2245_v3  ;;  %v1221_v58 = vshll.u32 %v1220_v39, 16 }
 0x336   : > { %v2249_v46 = vpop.eup %2248 }
 0x337   : > { %v2251_v35 = vpop.eup %2250  ;;  %v1751_v33 = vsel %vm2756_vm14, %v1735_v54, -inf  ;;  %v1710_v51 = vmul.f32 0.6931472, %v2249_v46  ;;  %1693 = vadd.xlane.f32.xlu1 %v2247_v61  ;;  %v1262_v54 = vcvt.f32.s32 %v3118_v27 }
 0x338   : > { %v2253_v42 = vpop.eup %2252  ;;  %1767 = vst [vmem:[%s3250_s30] sm:$0xff] %v1751_v33  ;;  %v1304_v33 = vcvt.f32.s32 %v3123_v23 }
 0x339   : > { %v1738_v43 = vsub.f32 %v3620_v17, %v1710_v51  ;;  %v1706_v9 = vmul.f32 0.6931472, %v2253_v42  ;;  %1687 = vadd.xlane.f32.xlu0 %v2251_v35  ;;  %v2255_v10 = vpop.eup %2254  ;;  %v3626_v35 = vld [vmem:[#allocation10_spill] sm:$0xff]  ;;  %v1263_v42 = vshll.u32 %v1262_v54, 16  ;;  %v1234_v17 = vcvt.f32.s32 %v3128_v37 }
 0x33a   : > { %v2257_v14 = vpop.eup %2256 }
 0x33b   : > { %v1754_v1 = vsel %vm2777_vm11, %v1738_v43, -inf  ;;  %v1736_v22 = vsub.f32 %v3622_v13, %v1706_v9  ;;  %1697 = vadd.xlane.f32.xlu1 %v2255_v10  ;;  %v1276_v9 = vcvt.f32.s32 %v3133_v40 }
 0x33c   : > { %v2259_v59 = vpop.eup %2258  ;;  %1770 = vst [vmem:[%s3250_s30 + $0x18] sm:$0xff] %v1754_v1  ;;  %v3628_v1 = vld [vmem:[#allocation11_spill] sm:$0xff] }
 0x33d   : > { %v1752_v52 = vsel %vm2767_vm10, %v1736_v22, -inf  ;;  %v1708_v60 = vmul.f32 0.6931472, %v2259_v59  ;;  %1691 = vadd.xlane.f32.xlu0 %v2257_v14  ;;  %v2261_v7 = vpop.eup %2260  ;;  %vm3627_vm10 = vcmp.gt.f32.partialorder %v3626_v35, 0.0  ;;  %v1305_v14 = vshll.u32 %v1304_v33, 16 }
 0x33e   : > { %1768 = vst [vmem:[%s3250_s30 + $0x8] sm:$0xff] %v1752_v52  ;;  %v2263_v55 = vpop.eup %2262  ;;  %vm3629_vm11 = vcmp.gt.f32.partialorder %v3628_v1, 0.0  ;;  %v1318_v22 = vcvt.f32.s32 %v3138_v18  ;;  %v1235_v59 = vshll.u32 %v1234_v17, 16  ;;  %v1277_v37 = vshll.u32 %v1276_v9, 16 }
 0x33f   : > { %v1737_v41 = vsub.f32 %v3624_v8, %v1708_v60  ;;  %1701 = vadd.xlane.f32.xlu1 %v2261_v7  ;;  %v2265_v11 = vpop.eup %2264  ;;  %v1290_v18 = vcvt.f32.s32 %v3152_v19 }
 0x341   : > { %v1753_v44 = vsel %vm2745_vm13, %v1737_v41, -inf  ;;  %1695 = vadd.xlane.f32.xlu0 %v2263_v55  ;;  %v3630_v55 = vld [vmem:[#allocation12_spill] sm:$0xff]  ;;  %v1291_v19 = vshll.u32 %v1290_v18, 16 }
 0x342   : > { %1769 = vst [vmem:[%s3250_s30 + $0x10] sm:$0xff] %v1753_v44  ;;  %vm3631_vm13 = vcmp.gt.f32.partialorder %v3630_v55, 0.0  ;;  %v1319_v44 = vshll.u32 %v1318_v22, 16  ;;  %v1346_v22 = vcvt.f32.s32 %v3183_v0  ;;  %v1388_v55 = vcvt.f32.s32 %v3179_v5  ;;  %v3646_v5 = vld [vmem:[#allocation19_spill] sm:$0xff] }
 0x345   : > { %1699 = vadd.xlane.f32.xlu0 %v2265_v11  ;;  %v1360_v11 = vcvt.f32.s32 %v3143_v47  ;;  %v1332_v47 = vcvt.f32.s32 %v3157_v30 }
 0x347   : > { %v1333_v1 = vshll.u32 %v1332_v47, 16  ;;  %v1430_v47 = vcvt.f32.s32 %v3222_v31 }
 0x38e   : > { %v1246_v63 = vpop.xlane.xlu1 %1245 }
 0x38f   : > { %v1247_v45 = vcvt.f32.s32 %v1246_v63 }
 0x391   : > { %v1250_v38 = vadd.s32 %v1249_v36, %v1247_v45 }
 0x392   : > { %v1218_v61 = vpop.xlane.xlu1 %1217 }
 0x393   : > { %v1435_v3 = vadd.s32 1, %v1250_v38  ;;  %v1219_v46 = vcvt.f32.s32 %v1218_v61  ;;  %v3632_v38 = vld [vmem:[#allocation17_spill] sm:$0xff] }
 0x394   : > { %vm3633_vm14 = vcmp.gt.f32.partialorder %v3632_v38, 0.0  ;;  %v1389_v38 = vshll.u32 %v1388_v55, 16 }
 0x395   : > { %v1451_v62 = vsel %vm3627_vm10, %v1435_v3, 0  ;;  %v1222_v51 = vadd.s32 %v1221_v58, %v1219_v46  ;;  %v3634_v46 = vld [vmem:[#allocation13_spill] sm:$0xff] }
 0x396   : > { %1472 = vperm.xlu1 %2201, %v1451_v62   ;;  %v1260_v12 = vpop.xlane.xlu0 %1259  ;;  %vm3635_vm3 = vcmp.gt.f32.partialorder %v3634_v46, 0.0  ;;  %v1361_v62 = vshll.u32 %v1360_v11, 16 }
 0x397   : > { %v1433_v43 = vadd.s32 1, %v1222_v51  ;;  %v1261_v48 = vcvt.f32.s32 %v1260_v12  ;;  %v1374_v51 = vcvt.f32.s32 %v3166_v24 }
 0x398   : > { %v1302_v10 = vpop.xlane.xlu1 %1301 }
 0x399   : > { %v1264_v26 = vadd.s32 %v1263_v42, %v1261_v48  ;;  %v1303_v27 = vcvt.f32.s32 %v1302_v10  ;;  %v1449_v13 = vsel %vm3629_vm11, %v1433_v43, 0  ;;  %v3636_v10 = vld [vmem:[#allocation15_spill] sm:$0xff] }
 0x39a   : > { %1466 = vperm.xlu1 %2201, %v1449_v13   ;;  %v1232_v23 = vpop.xlane.xlu0 %1231  ;;  %vm3637_vm15 = vcmp.gt.f32.partialorder %v3636_v10, 0.0  ;;  %v1375_v13 = vshll.u32 %v1374_v51, 16 }
 0x39b   : > { %v1436_v2 = vadd.s32 1, %v1264_v26  ;;  %v1306_v52 = vadd.s32 %v1305_v14, %v1303_v27  ;;  %v1233_v60 = vcvt.f32.s32 %v1232_v23  ;;  %v3638_v26 = vld [vmem:[#allocation16_spill] sm:$0xff] }
 0x39c   : > { %v1274_v7 = vpop.xlane.xlu1 %1273  ;;  %vm3639_vm2 = vcmp.gt.f32.partialorder %v3638_v26, 0.0 }
 0x39d   : > { %v1439_v8 = vadd.s32 1, %v1306_v52  ;;  %v1236_v41 = vadd.s32 %v1235_v59, %v1233_v60  ;;  %v1275_v40 = vcvt.f32.s32 %v1274_v7  ;;  %v1452_v4 = vsel %vm3631_vm13, %v1436_v2, 0  ;;  %v3640_v60 = vld [vmem:[#allocation14_spill] sm:$0xff] }
 0x39e   : > { %1475 = vperm.xlu1 %2201, %v1452_v4   ;;  %v1316_v16 = vpop.xlane.xlu0 %1315  ;;  %vm3641_vm10 = vcmp.gt.f32.partialorder %v3640_v60, 0.0  ;;  %v1416_v4 = vcvt.f32.s32 %v3197_v56 }
 0x39f   : > { %v1434_v63 = vadd.s32 1, %v1236_v41  ;;  %v1278_v36 = vadd.s32 %v1277_v37, %v1275_v40  ;;  %v1317_v45 = vcvt.f32.s32 %v1316_v16  ;;  %v1455_v3 = vsel %vm3633_vm14, %v1439_v8, 0  ;;  %v3642_v16 = vld [vmem:[#allocation21_spill] sm:$0xff] }
 0x3a0   : > { %v1358_v39 = vpop.xlane.xlu1 %1357  ;;  %v1347_v8 = vshll.u32 %v1346_v22, 16  ;;  %vm3643_vm11 = vcmp.gt.f32.partialorder %v3642_v16, 0.0  ;;  %vm3647_vm14 = vcmp.gt.f32.partialorder %v3646_v5, 0.0 }
 0x3a1   : > { %v1437_v61 = vadd.s32 1, %v1278_v36  ;;  %v1320_v58 = vadd.s32 %v1319_v44, %v1317_v45  ;;  %v1359_v54 = vcvt.f32.s32 %v1358_v39  ;;  %v1450_v35 = vsel %vm3635_vm3, %v1434_v63, 0  ;;  %v3644_v63 = vld [vmem:[#allocation20_spill] sm:$0xff] }
 0x3a2   : > { %1484 = vperm.xlu1 %2201, %v1455_v3   ;;  %1469 = vperm.xlu0 %2200, %v1450_v35   ;;  %v1288_v33 = vpop.xlane.xlu0 %1287  ;;  %vm3645_vm13 = vcmp.gt.f32.partialorder %v3644_v63, 0.0  ;;  %v1402_v35 = vcvt.f32.s32 %v3206_v21 }
 0x3a3   : > { %v1440_v12 = vadd.s32 1, %v1320_v58  ;;  %v1289_v42 = vcvt.f32.s32 %v1288_v33  ;;  %v1362_v17 = vadd.s32 %v1361_v62, %v1359_v54  ;;  %v1453_v14 = vsel %vm3637_vm15, %v1437_v61, 0  ;;  %v3648_v54 = vld [vmem:[#allocation18_spill] sm:$0xff] }
 0x3a4   : > { %v1330_v43 = vpop.xlane.xlu1 %1329  ;;  %v1417_v61 = vshll.u32 %v1416_v4, 16  ;;  %vm3649_vm3 = vcmp.gt.f32.partialorder %v3648_v54, 0.0 }
 0x3a5   : > { %v1292_v48 = vadd.s32 %v1291_v19, %v1289_v42  ;;  %v1331_v9 = vcvt.f32.s32 %v1330_v43  ;;  %v1456_v27 = vsel %vm3639_vm2, %v1440_v12, 0  ;;  %v1443_v59 = vadd.s32 1, %v1362_v17 }
 0x3a6   : > { %1478 = vperm.xlu0 %2200, %v1453_v14   ;;  %1487 = vperm.xlu1 %2201, %v1456_v27   ;;  %v1372_v30 = vpop.xlane.xlu0 %1371  ;;  %v1403_v17 = vshll.u32 %v1402_v35, 16  ;;  %v3650_v14 = vld [vmem:[#allocation23_spill] sm:$0xff] }
 0x3a7   : > { %v1438_v24 = vadd.s32 1, %v1292_v48  ;;  %v1373_v23 = vcvt.f32.s32 %v1372_v30  ;;  %v1334_v2 = vadd.s32 %v1333_v1, %v1331_v9  ;;  %v1459_v18 = vsel %vm3643_vm11, %v1443_v59, 0  ;;  %v3654_v59 = vld [vmem:[#allocation22_spill] sm:$0xff] }
 0x3a8   : > { %v1431_v48 = vshll.u32 %v1430_v47, 16  ;;  %vm3651_vm15 = vcmp.gt.f32.partialorder %v3650_v14, 0.0 }
 0x3a9   : > { %v1376_v52 = vadd.s32 %v1375_v13, %v1373_v23  ;;  %v1454_v37 = vsel %vm3641_vm10, %v1438_v24, 0  ;;  %v1441_v11 = vadd.s32 1, %v1334_v2  ;;  %v3652_v13 = vld [vmem:[#allocation25_spill] sm:$0xff]  ;;  %vm3655_vm10 = vcmp.gt.f32.partialorder %v3654_v59, 0.0 }
 0x3aa   : > { %1481 = vperm.xlu0 %2200, %v1454_v37   ;;  %v1344_v7 = vpop.xlane.xlu0 %1343  ;;  %vm3653_vm2 = vcmp.gt.f32.partialorder %v3652_v13, 0.0  ;;  %v3656_v37 = vld [vmem:[#allocation24_spill] sm:$0xff] }
 0x3ab   : > { %v1444_v41 = vadd.s32 1, %v1376_v52  ;;  %v1345_v40 = vcvt.f32.s32 %v1344_v7  ;;  %v1457_v56 = vsel %vm3647_vm14, %v1441_v11, 0  ;;  %vm3657_vm11 = vcmp.gt.f32.partialorder %v3656_v37, 0.0 }
 0x3ac   : > { %v1414_v44 = vpop.xlane.xlu1 %1413 }
 0x3ad   : > { %v1348_v0 = vadd.s32 %v1347_v8, %v1345_v40  ;;  %v1460_v36 = vsel %vm3645_vm13, %v1444_v41, 0  ;;  %v1415_v39 = vcvt.f32.s32 %v1414_v44 }
 0x3ae   : > { %1496 = vperm.xlu0 %2200, %v1459_v18   ;;  %1499 = vperm.xlu1 %2201, %v1460_v36  }
 0x3af   : > { %v1442_v45 = vadd.s32 1, %v1348_v0  ;;  %v1418_v33 = vadd.s32 %v1417_v61, %v1415_v39 }
 0x3b0   : > { %v1386_v3 = vpop.xlane.xlu1 %1385 }
 0x3b1   : > { %v1387_v58 = vcvt.f32.s32 %v1386_v3  ;;  %v1458_v46 = vsel %vm3649_vm3, %v1442_v45, 0  ;;  %v1447_v9 = vadd.s32 1, %v1418_v33 }
 0x3b2   : > { %1490 = vperm.xlu0 %2200, %v1457_v56   ;;  %1493 = vperm.xlu1 %2201, %v1458_v46   ;;  %v1428_v62 = vpop.xlane.xlu0 %1427 }
 0x3b3   : > { %v1390_v19 = vadd.s32 %v1389_v38, %v1387_v58  ;;  %v1429_v42 = vcvt.f32.s32 %v1428_v62  ;;  %v1463_v22 = vsel %vm3653_vm2, %v1447_v9, 0  ;;  %v3663_v9 = vld [vmem:[#allocation36_spill] sm:$0xff] }
 0x3b4   : > { %v1682_v51 = vpop.xlane.xlu1 %1681 }
 0x3b5   : > { %v1445_v12 = vadd.s32 1, %v1390_v19  ;;  %2266 = vlog2.f32 %v1682_v51  ;;  %v1432_v27 = vadd.s32 %v1431_v48, %v1429_v42 }
 0x3b6   : > { %v1400_v43 = vpop.xlane.xlu0 %1399 }
 0x3b7   : > { %v1401_v10 = vcvt.f32.s32 %v1400_v43  ;;  %v1461_v26 = vsel %vm3651_vm15, %v1445_v12, 0  ;;  %v1448_v23 = vadd.s32 1, %v1432_v27 }
 0x3b8   : > { %v1686_v21 = vpop.xlane.xlu1 %1685  ;;  %1502 = vperm.xlu0 %2200, %v1461_v26  }
 0x3b9   : > { %v1404_v1 = vadd.s32 %v1403_v17, %v1401_v10  ;;  %2268 = vlog2.f32 %v1686_v21  ;;  %v1464_v7 = vsel %vm3657_vm11, %v1448_v23, 0  ;;  %v3665_v21 = vld [vmem:[#allocation37_spill] sm:$0xff]  ;;  %v3668_v23 = vld [vmem:[#allocation35_spill] sm:$0xff] }
 0x3ba   : > { %v1680_v31 = vpop.xlane.xlu0 %1679 }
 0x3bb   : > { %v1446_v30 = vadd.s32 1, %v1404_v1  ;;  %2270 = vlog2.f32 %v1680_v31 }
 0x3bc   : > { %v1690_v24 = vpop.xlane.xlu1 %1689  ;;  %1508 = vperm.xlu0 %2200, %v1463_v22  }
 0x3bd   : > { %2272 = vlog2.f32 %v1690_v24  ;;  %v1462_v2 = vsel %vm3655_vm10, %v1446_v30, 0 }
 0x3be   : > { %1505 = vperm.xlu1 %2201, %v1462_v2   ;;  %v1684_v52 = vpop.xlane.xlu0 %1683 }
 0x3bf   : > { %2274 = vlog2.f32 %v1684_v52 }
 0x3c0   : > { %v1694_v60 = vpop.xlane.xlu1 %1693 }
 0x3c1   : > { %2276 = vlog2.f32 %v1694_v60 }
 0x3c2   : > { %v2267_v8 = vpop.eup %2266  ;;  %1511 = vperm.xlu1 %2201, %v1464_v7   ;;  %v1688_v41 = vpop.xlane.xlu0 %1687 }
 0x3c3   : > { %v1714_v40 = vmul.f32 0.6931472, %v2267_v8  ;;  %2278 = vlog2.f32 %v1688_v41 }
 0x3c4   : > { %v1698_v55 = vpop.xlane.xlu1 %1697 }
 0x3c5   : > { %v1740_v4 = vsub.f32 %v3148_v34, %v1714_v40  ;;  %2280 = vlog2.f32 %v1698_v55 }
 0x3c6   : > { %v2269_v44 = vpop.eup %2268  ;;  %v1692_v11 = vpop.xlane.xlu0 %1691 }
 0x3c7   : > { %v1756_v16 = vsel %vm2821_vm4, %v1740_v4, -inf  ;;  %v1718_v18 = vmul.f32 0.6931472, %v2269_v44  ;;  %2282 = vlog2.f32 %v1692_v11 }
 0x3c8   : > { %v2271_v63 = vpop.eup %2270  ;;  %1772 = vst [vmem:[%s3250_s30 + $0x28] sm:$0xff] %v1756_v16  ;;  %v1702_v36 = vpop.xlane.xlu1 %1701 }
 0x3c9   : > { %v1742_v45 = vsub.f32 %v3161_v6, %v1718_v18  ;;  %v1712_v39 = vmul.f32 0.6931472, %v2271_v63  ;;  %2284 = vlog2.f32 %v1702_v36 }
 0x3ca   : > { %v2273_v38 = vpop.eup %2272  ;;  %v1696_v3 = vpop.xlane.xlu0 %1695 }
 0x3cb   : > { %v1758_v61 = vsel %vm2800_vm6, %v1742_v45, -inf  ;;  %v1739_v58 = vsub.f32 %v3171_v57, %v1712_v39  ;;  %v1722_v5 = vmul.f32 0.6931472, %v2273_v38  ;;  %2286 = vlog2.f32 %v1696_v3 }
 0x3cc   : > { %v2275_v56 = vpop.eup %2274  ;;  %1774 = vst [vmem:[%s3250_s30 + $0x38] sm:$0xff] %v1758_v61  ;;  %vm3666_vm6 = vnez %v3665_v21 }
 0x3cd   : > { %v1755_v46 = vsel %vm2810_vm5, %v1739_v58, -inf  ;;  %v1744_v6 = vsub.f32 %v3177_v53, %v1722_v5  ;;  %v1716_v35 = vmul.f32 0.6931472, %v2275_v56  ;;  %vm3664_vm5 = vnez %v3663_v9 }
 0x3ce   : > { %v2277_v62 = vpop.eup %2276  ;;  %1771 = vst [vmem:[%s3250_s30 + $0x20] sm:$0xff] %v1755_v46  ;;  %v1700_v47 = vpop.xlane.xlu0 %1699 }
 0x3cf   : > { %v1760_v19 = vsel %vm2865_vm9, %v1744_v6, -inf  ;;  %v1741_v57 = vsub.f32 %v3187_v25, %v1716_v35  ;;  %v1726_v51 = vmul.f32 0.6931472, %v2277_v62  ;;  %2288 = vlog2.f32 %v1700_v47 }
 0x3d0   : > { %v2279_v12 = vpop.eup %2278  ;;  %1776 = vst [vmem:[%s3250_s30 + $0x48] sm:$0xff] %v1760_v19 }
 0x3d1   : > { %v1757_v17 = vsel %vm2788_vm12, %v1741_v57, -inf  ;;  %v1746_v53 = vsub.f32 %v3192_v32, %v1726_v51  ;;  %v1720_v43 = vmul.f32 0.6931472, %v2279_v12  ;;  %vm3669_vm12 = vnez %v3668_v23 }
 0x3d2   : > { %v2281_v48 = vpop.eup %2280  ;;  %1773 = vst [vmem:[%s3250_s30 + $0x30] sm:$0xff] %v1757_v17 }
 0x3d3   : > { %v1762_v10 = vsel %vm3664_vm5, %v1746_v53, -inf  ;;  %v1743_v14 = vsub.f32 %v3204_v50, %v1720_v43  ;;  %v1730_v25 = vmul.f32 0.6931472, %v2281_v48 }
 0x3d4   : > { %v2283_v26 = vpop.eup %2282  ;;  %1778 = vst [vmem:[%s3250_s30 + $0x58] sm:$0xff] %v1762_v10 }
 0x3d5   : > { %v1759_v27 = vsel %vm3666_vm6, %v1743_v14, -inf  ;;  %v1748_v1 = vsub.f32 %v3219_v28, %v1730_v25  ;;  %v1724_v32 = vmul.f32 0.6931472, %v2283_v26 }
 0x3d6   : > { %v2285_v31 = vpop.eup %2284  ;;  %1775 = vst [vmem:[%s3250_s30 + $0x40] sm:$0xff] %v1759_v27 }
 0x3d7   : > { %v1764_v13 = vsel %vm2894_vm0, %v1748_v1, -inf  ;;  %v1745_v50 = vsub.f32 %v3215_v15, %v1724_v32  ;;  %v1734_v22 = vmul.f32 0.6931472, %v2285_v31 }
 0x3d8   : > { %v2287_v24 = vpop.eup %2286  ;;  %1780 = vst [vmem:[%s3250_s30 + $0x68] sm:$0xff] %v1764_v13 }
 0x3d9   : > { %v1761_v59 = vsel %vm3669_vm12, %v1745_v50, -inf  ;;  %v1750_v28 = vsub.f32 %v3230_v49, %v1734_v22  ;;  %v1728_v2 = vmul.f32 0.6931472, %v2287_v24 }
 0x3da   : > { %1777 = vst [vmem:[%s3250_s30 + $0x50] sm:$0xff] %v1761_v59 }
 0x3db   : > { %v1766_v60 = vsel %vm2910_vm8, %v1750_v28, -inf  ;;  %v1747_v37 = vsub.f32 %v3237_v20, %v1728_v2 }
 0x3dc   : > { %v2289_v15 = vpop.eup %2288  ;;  %1782 = vst [vmem:[%s3250_s30 + $0x78] sm:$0xff] %v1766_v60 }
 0x3dd   : > { %v1763_v8 = vsel %vm2877_vm7, %v1747_v37, -inf  ;;  %v1732_v41 = vmul.f32 0.6931472, %v2289_v15 }
 0x3de   : > { %1779 = vst [vmem:[%s3250_s30 + $0x60] sm:$0xff] %v1763_v8 }
 0x3df   : > { %v1749_v49 = vsub.f32 %v3243_v29, %v1732_v41 }
 0x3e1   : > { %v1765_v40 = vsel %vm2888_vm1, %v1749_v49, -inf }
 0x3e2   : > { %1781 = vst [vmem:[%s3250_s30 + $0x70] sm:$0xff] %v1765_v40 }
 0x3e3   : > { %2303 = shalt.err (!%p2300_p8)
}
 0x3e4   : > { %s2304_s22 = scalar_lea.hbm %s3363_s11, 2048  ;;  %s2308_s16 = scalar_lea.hbm %s3478_s6, 4096 }
 0x3e5   : > { %p2305_p11 = scmp.ne.s32.totalorder %s3363_s11, %s2304_s22  ;;  %p2309_p0 = scmp.lt.s32.totalorder %s3363_s11, %s3478_s6 }
 0x3e6   : > { %p2310_p1 = scmp.lt.s32.totalorder %s2308_s16, %s2304_s22 }
 0x3e7   : > { %p2306_p12 = pnand %p2305_p11, %p2486_p5 }
 0x3e8   : > { %p2311_p2 = por %p2310_p1, %p2309_p0 }
 0x3e9   : > { %p2307_p13 = pneg %p2306_p12 }
 0x3eb   : > { %p2312_p3 = pnand %p2311_p2, %p2307_p13 }
 0x3ed   : > { %2315 = shalt.err (!%p2312_p3)
}
 0x3ee   : > { %s2400_s18 = smov 128   ;;  %s2401_s21 = smov 8   ;;  %v3673_v4 = vld [vmem:[#allocation44_spill] sm:$0xff]  ;;  %v3674_v16 = vld [vmem:[#allocation26_spill] sm:$0xff]  ;;  %vm1522_vm1 = vcmask 130112   ;;  %vm1529_vm7 = vcmask 195712  }
 0x3ef   : > { %2137 = dma.vmem_to_hbm [thread:$0]  (%p2486_p5), %s3365_s10, 2048, %s3363_s11, %s1784_s17, %s2400_s18, %s2400_s18, %s2401_s21   ;;  %v1517_v44 = vadd.s32 4294967288, %v3673_v4  ;;  %v1524_v11 = vadd.s32 4294967280, %v3673_v4  ;;  %v1515_v18 = vsub.s32 %v3673_v4, %v3674_v16  ;;  %v1531_v36 = vadd.s32 4294967272, %v3673_v4 }
 0x3f0   : > { %v1538_v38 = vadd.s32 4294967264, %v3673_v4  ;;  %v1545_v61 = vadd.s32 4294967256, %v3673_v4  ;;  %v1552_v62 = vadd.s32 4294967248, %v3673_v4  ;;  %vm1536_vm4 = vcmask 261312   ;;  %s2034_s10 = sshll.u32 %s2388_s27, 4  ;;  %s573_s11 = scalar_lea.vmem [#allocation6], %s2560_s19 }
 0x3f1   : > { %v1520_v63 = vsub.s32 %v1517_v44, %v3674_v16  ;;  %v1527_v45 = vsub.s32 %v1524_v11, %v3674_v16  ;;  %v1534_v5 = vsub.s32 %v1531_v36, %v3674_v16  ;;  %v1559_v19 = vadd.s32 4294967240, %v3673_v4  ;;  %s1820_s17 = sshll.u32 %s573_s11, 4  ;;  %s3430_s30 = scalar_lea.hbm %s3479_s7, %s2034_s10  ;;  %s1821_s17 = int_to_ptr.vmem [resolvable:$true] %s1820_s17 }
 0x3f2   : > { %v1541_v46 = vsub.s32 %v1538_v38, %v3674_v16  ;;  %v1548_v35 = vsub.s32 %v1545_v61, %v3674_v16  ;;  %vm1543_vm9 = vcmask 326912   ;;  %v1566_v53 = vadd.s32 4294967232, %v3673_v4  ;;  %s1789_s8 = scalar_lea.sflag [#allocation7], %s2560_s19  ;;  %s2316_s16 = scalar_lea.vmem %s1821_s17, 16 }
 0x3f3   : > { %v1555_v43 = vsub.s32 %v1552_v62, %v3674_v16  ;;  %vm1550_vm0 = vcmask 392512   ;;  %v1573_v48 = vadd.s32 4294967224, %v3673_v4  ;;  %v1562_v25 = vsub.s32 %v1559_v19, %v3674_v16  ;;  %p2317_p4 = scmp.ne.s32.totalorder %s1821_s17, %s2316_s16  ;;  %s2402_s27 = smov [#allocation6]  }
 0x3f4   : > { %vm1557_vm8 = vcmask 458112   ;;  %v1569_v21 = vsub.s32 %v1566_v53, %v3674_v16  ;;  %v1580_v31 = vadd.s32 4294967216, %v3673_v4  ;;  %vm1564_vm13 = vcmask 523712   ;;  %s2320_s13 = sshll.u32 %s2402_s27, 4  ;;  %s2321_s13 = int_to_ptr.vmem [resolvable:$false] %s2320_s13 }
 0x3f5   : > { %v1576_v1 = vsub.s32 %v1573_v48, %v3674_v16  ;;  %vm1571_vm14 = vcmask 589312   ;;  %v1594_v24 = vadd.s32 4294967200, %v3673_v4  ;;  %v1587_v23 = vadd.s32 4294967208, %v3673_v4  ;;  %p2318_p6 = pnand %p2317_p4, %p2486_p5  ;;  %s2322_s20 = scalar_lea.vmem %s2321_s13, 32 }
 0x3f6   : > { %v1583_v2 = vsub.s32 %v1580_v31, %v3674_v16  ;;  %vm1578_vm3 = vcmask 654912   ;;  %v1601_v60 = vadd.s32 4294967192, %v3673_v4  ;;  %vm1585_vm15 = vcmask 720512   ;;  %p2323_p8 = scmp.lt.s32.totalorder %s1821_s17, %s2321_s13  ;;  %p2324_p11 = scmp.lt.s32.totalorder %s2322_s20, %s2316_s16 }
 0x3f7   : > { %v1597_v37 = vsub.s32 %v1594_v24, %v3674_v16  ;;  %v1590_v15 = vsub.s32 %v1587_v23, %v3674_v16  ;;  %v1608_v49 = vadd.s32 4294967184, %v3673_v4  ;;  %v1615_v40 = vadd.s32 4294967176, %v3673_v4  ;;  %p2319_p7 = pneg %p2318_p6 }
 0x3f8   : > { %v1604_v20 = vsub.s32 %v1601_v60, %v3674_v16  ;;  %vm1592_vm2 = vcmask 786112   ;;  %vm1599_vm10 = vcmask 851712   ;;  %vm1606_vm11 = vcmask 917312   ;;  %p2325_p12 = por %p2324_p11, %p2323_p8 }
 0x3f9   : > { %v1611_v11 = vsub.s32 %v1608_v49, %v3674_v16  ;;  %vm1613_vm5 = vcmask 982912   ;;  %vm1620_vm6 = vcmask 1048512  }
 0x3fa   : > { %p2326_p13 = pnand %p2325_p12, %p2319_p7 }
 0x411   : > { %v1473_v29 = vpop.permute.xlu1 %1472 }
 0x412   : > { %v1528_v54 = vrot.slane %v1473_v29, %v1527_v45  ;;  %v1618_v45 = vsub.s32 %v1615_v40, %v3674_v16 }
 0x415   : > { %v1467_v55 = vpop.permute.xlu1 %1466 }
 0x416   : > { %v1516_v3 = vrot.slane %v1467_v55, %v1515_v18 }
 0x419   : > { %v1476_v0 = vpop.permute.xlu1 %1475 }
 0x41a   : > { %v1535_v33 = vrot.slane %v1476_v0, %v1534_v5 }
 0x41d   : > { %v1470_v39 = vpop.permute.xlu0 %1469  ;;  %v1485_v58 = vpop.permute.xlu1 %1484 }
 0x41e   : > { %v1521_v34 = vrot.slane %v1470_v39, %v1520_v63  ;;  %v1556_v27 = vrot.slane %v1485_v58, %v1555_v43 }
 0x420   : > { %v1523_v56 = vsel %vm1522_vm1, %v1521_v34, %v1516_v3 }
 0x421   : > { %v1479_v6 = vpop.permute.xlu0 %1478  ;;  %v1530_v47 = vsel %vm1529_vm7, %v1528_v54, %v1523_v56  ;;  %v1488_v57 = vpop.permute.xlu1 %1487 }
 0x422   : > { %v1542_v51 = vrot.slane %v1479_v6, %v1541_v46  ;;  %v1537_v42 = vsel %vm1536_vm4, %v1535_v33, %v1530_v47  ;;  %v1563_v50 = vrot.slane %v1488_v57, %v1562_v25 }
 0x424   : > { %v1544_v9 = vsel %vm1543_vm9, %v1542_v51, %v1537_v42 }
 0x425   : > { %v1482_v12 = vpop.permute.xlu0 %1481 }
 0x426   : > { %v1549_v17 = vrot.slane %v1482_v12, %v1548_v35 }
 0x428   : > { %v1551_v26 = vsel %vm1550_vm0, %v1549_v17, %v1544_v9 }
 0x429   : > { %v1500_v10 = vpop.permute.xlu1 %1499  ;;  %v1497_v14 = vpop.permute.xlu0 %1496  ;;  %v1558_v32 = vsel %vm1557_vm8, %v1556_v27, %v1551_v26 }
 0x42a   : > { %v1565_v28 = vsel %vm1564_vm13, %v1563_v50, %v1558_v32  ;;  %v1584_v41 = vrot.slane %v1497_v14, %v1583_v2  ;;  %v1591_v44 = vrot.slane %v1500_v10, %v1590_v15 }
 0x42d   : > { %v1494_v30 = vpop.permute.xlu1 %1493  ;;  %v1491_v13 = vpop.permute.xlu0 %1490 }
 0x42e   : > { %v1570_v22 = vrot.slane %v1491_v13, %v1569_v21  ;;  %v1577_v59 = vrot.slane %v1494_v30, %v1576_v1 }
 0x430   : > { %v1572_v52 = vsel %vm1571_vm14, %v1570_v22, %v1565_v28 }
 0x431   : > { %v1579_v7 = vsel %vm1578_vm3, %v1577_v59, %v1572_v52 }
 0x432   : > { %v1586_v29 = vsel %vm1585_vm15, %v1584_v41, %v1579_v7 }
 0x433   : > { %v1503_v8 = vpop.permute.xlu0 %1502  ;;  %v1593_v18 = vsel %vm1592_vm2, %v1591_v44, %v1586_v29 }
 0x434   : > { %v1598_v55 = vrot.slane %v1503_v8, %v1597_v37 }
 0x436   : > { %v1600_v39 = vsel %vm1599_vm10, %v1598_v55, %v1593_v18 }
 0x437   : > { %v1509_v63 = vpop.permute.xlu0 %1508 }
 0x438   : > { %v1612_v4 = vrot.slane %v1509_v63, %v1611_v11 }
 0x439   : > { %v1506_v0 = vpop.permute.xlu1 %1505 }
 0x43a   : > { %v1605_v36 = vrot.slane %v1506_v0, %v1604_v20 }
 0x43c   : > { %v1607_v38 = vsel %vm1606_vm11, %v1605_v36, %v1600_v39 }
 0x43d   : > { %v1512_v3 = vpop.permute.xlu1 %1511  ;;  %v1614_v61 = vsel %vm1613_vm5, %v1612_v4, %v1607_v38 }
 0x43e   : > { %v1619_v34 = vrot.slane %v1512_v3, %v1618_v45 }
 0x440   : > { %v1621_v16 = vsel %vm1620_vm6, %v1619_v34, %v1614_v61 }
 0x441   : > { %1622 = vst [vmem:[%s573_s11] sm:$0x1] %v1621_v16 }
 0x442   : > { %2329 = shalt.err (!%p2326_p13)
}
 0x443   : > { %s2330_s18 = scalar_lea.hbm %s3430_s30, 16  ;;  %s2334_s10 = scalar_lea.hbm %s3479_s7, 32 }
 0x444   : > { %p2331_p0 = scmp.ne.s32.totalorder %s3430_s30, %s2330_s18  ;;  %p2335_p3 = scmp.lt.s32.totalorder %s3430_s30, %s3479_s7 }
 0x445   : > { %p2336_p4 = scmp.lt.s32.totalorder %s2334_s10, %s2330_s18 }
 0x446   : > { %p2332_p1 = pnand %p2331_p0, %p2486_p5 }
 0x447   : > { %p2337_p6 = por %p2336_p4, %p2335_p3 }
 0x448   : > { %p2333_p2 = pneg %p2332_p1 }
 0x44a   : > { %p2338_p7 = pnand %p2337_p6, %p2333_p2 }
 0x44c   : > { %2341 = shalt.err (!%p2338_p7)
}
 0x44d   : > { %2138 = dma.vmem_to_hbm [thread:$0]  (%p2486_p5), %s1821_s17, 16, %s3430_s30, %s1789_s8  }
 0x44e PF: > { %s1832_s22 = sand.u32 1, %s2376_s24   ;;  %p2142_p8 = pnand %p1977_p10, %p2497_p9 }
 0x44f   : > { %s1833_s16 = scalar_lea.sflag [#allocation5], %s1832_s22 }
 0x450   : > { %p2143_p11 = pneg %p2142_p8 }
 0x452   : > { %2367 = dma.done.wait (%p2143_p11), %s1833_s16, 2048  }
 0x453   : > { %2369 = vsyncadd (%p2143_p11), %s1833_s16, 4294965248  ;;  %s1842_s27 = scalar_lea.sflag [#allocation7], %s1832_s22 }
 0x454   : > { %2371 = dma.done.wait (%p2143_p11), %s1842_s27, 16  }
 0x455   : > { %2373 = vsyncadd (%p2143_p11), %s1842_s27, 4294967280  ;;  %s24_s29 = sadd.s32 1, %s2396_s29   ;;  %s3675_s24 = smov %s2380_s25 }
 0x456   : > { %p21_p12 = scmp.ge.s32.totalorder %s24_s29, 4   ;;  %s3676_s25 = smov %s2384_s26 }
 0x457   : > { %s3677_s26 = smov %s2495_s14  ;;  %s3678_s27 = smov %s2392_s28 }
 0x458   : > { %s3679_s28 = smov %s3681_s9  ;;  %23 = sbr.rel (!%p21_p12) target bundleno = 6 (0x6), region = 197 }
 0x45d   :  { %1846 = vsyncpa [#allocation5], 1 }
 0x45e   :  { %1848 = vsyncpa [#allocation5 + $0x1], 1 }
 0x45f   :  { %1849 = vsyncpa [#allocation7], 1 }
 0x460   :  { %1851 = vsyncpa [#allocation7 + $0x1], 1 }

// kernel: _forward_impl.2
= control target key start
LH: loop header
LB: loop body
LE: loop exit
PB: predicated region body
PF: predicated region fallthrough
CT: control target
= control target key end

     0   :  { %v889_v1 = vmov 0   ;;  %v65_v33 = vlaneseq  ;;  %s1189_s1 = inlined_call_operand.vmem [shape: bf16[128,256], index: 1, kind: input, shape index: {}]   ;;  %s1190_s0 = inlined_call_operand.vmem [shape: bf16[256,128], index: 0, kind: input, shape index: {}]   ;;  %s1191_s2 = inlined_call_operand.vmem [shape: f32[1,256], index: 2, kind: input, shape index: {}]   ;;  %s1192_s3 = inlined_call_operand.vmem [shape: bf16[256,256], index: 3, kind: output, shape index: {}]  }
   0x1   :  { %v849_v0 = vld [vmem:[%s1189_s1 + $0x74] ss:$8 sps:$4 sm:$0xff]   ;;  %283 = vmatprep.mubr.bf16.mxu0 %v889_v1  ;;  %363 = vmatprep.mubr.bf16.mxu1 %v889_v1  ;;  %v851_v2 = vld [vmem:[%s1189_s1 + $0x70] ss:$8 sps:$4 sm:$0xff]   ;;  %v852_v3 = vld [vmem:[%s1189_s1 + $0x64] ss:$8 sps:$4 sm:$0xff]  }
   0x2   :  { %251 = vmatprep.subr.bf16.mxu0 %v849_v0  ;;  %832 = vmatprep.subr.bf16.mxu1 %v849_v0  ;;  %v854_v4 = vld [vmem:[%s1189_s1 + $0x60] ss:$8 sps:$4 sm:$0xff]   ;;  %v855_v5 = vld [vmem:[%s1189_s1 + $0x54] ss:$8 sps:$4 sm:$0xff]   ;;  %v857_v6 = vld [vmem:[%s1189_s1 + $0x50] ss:$8 sps:$4 sm:$0xff]  }
   0x3   :  { %252 = vmatpush1.bf16.msra.mxu0 %v851_v2  ;;  %840 = vmatpush1.bf16.msra.mxu1 %v851_v2  ;;  %v858_v7 = vld [vmem:[%s1189_s1 + $0x44] ss:$8 sps:$4 sm:$0xff]   ;;  %v860_v8 = vld [vmem:[%s1189_s1 + $0x40] ss:$8 sps:$4 sm:$0xff]   ;;  %v861_v9 = vld [vmem:[%s1189_s1 + $0x34] ss:$8 sps:$4 sm:$0xff]  }
   0x4   :  { %253 = vmatprep.subr.bf16.mxu0 %v852_v3  ;;  %833 = vmatprep.subr.bf16.mxu1 %v852_v3  ;;  %v863_v10 = vld [vmem:[%s1189_s1 + $0x30] ss:$8 sps:$4 sm:$0xff]   ;;  %v864_v11 = vld [vmem:[%s1189_s1 + $0x24] ss:$8 sps:$4 sm:$0xff]   ;;  %v866_v12 = vld [vmem:[%s1189_s1 + $0x20] ss:$8 sps:$4 sm:$0xff]  }
   0x5   :  { %v867_v13 = vld [vmem:[%s1189_s1 + $0x14] ss:$8 sps:$4 sm:$0xff]   ;;  %v869_v14 = vld [vmem:[%s1189_s1 + $0x10] ss:$8 sps:$4 sm:$0xff]   ;;  %v870_v15 = vld [vmem:[%s1189_s1 + $0x4] ss:$8 sps:$4 sm:$0xff]  }
   0x6   :  { %v872_v16 = vld [vmem:[%s1189_s1] ss:$8 sps:$4 sm:$0xff]   ;;  %v877_v21 = vld [vmem:[%s1190_s0 + $0x10] sm:$0xff]   ;;  %v879_v23 = vld [vmem:[%s1190_s0 + $0x18] sm:$0xff]   ;;  %v66_v34 = vshrl.u32 %v65_v33, 7 }
   0x7   :  { %254 = vmatpush1.bf16.msra.mxu0 %v854_v4  ;;  %841 = vmatpush1.bf16.msra.mxu1 %v854_v4  ;;  %v873_v17 = vld [vmem:[%s1190_s0] sm:$0xff]   ;;  %v875_v19 = vld [vmem:[%s1190_s0 + $0x8] sm:$0xff]   ;;  %v878_v22 = vld [vmem:[%s1190_s0 + $0x50] sm:$0xff]  }
   0x8   :  { %255 = vmatprep.subr.bf16.mxu0 %v855_v5  ;;  %834 = vmatprep.subr.bf16.mxu1 %v855_v5  ;;  %v874_v18 = vld [vmem:[%s1190_s0 + $0x40] sm:$0xff]   ;;  %v876_v20 = vld [vmem:[%s1190_s0 + $0x48] sm:$0xff]   ;;  %v880_v24 = vld [vmem:[%s1190_s0 + $0x58] sm:$0xff]   ;;  %v67_v35 = vsub.s32 0, %v66_v34  ;;  %v71_v37 = vsub.s32 1, %v66_v34 }
   0x9   :  { %v881_v25 = vld [vmem:[%s1190_s0 + $0x20] sm:$0xff]   ;;  %v883_v27 = vld [vmem:[%s1190_s0 + $0x28] sm:$0xff]   ;;  %v885_v29 = vld [vmem:[%s1190_s0 + $0x30] sm:$0xff]  }
   0xa   :  { %v882_v26 = vld [vmem:[%s1190_s0 + $0x60] sm:$0xff]   ;;  %v884_v28 = vld [vmem:[%s1190_s0 + $0x68] sm:$0xff]   ;;  %v886_v30 = vld [vmem:[%s1190_s0 + $0x70] sm:$0xff]  }
   0xb   :  { %256 = vmatpush1.bf16.msra.mxu0 %v857_v6  ;;  %842 = vmatpush1.bf16.msra.mxu1 %v857_v6  ;;  %v887_v31 = vld [vmem:[%s1190_s0 + $0x38] sm:$0xff]   ;;  %v63_v36 = vld [vmem:[%s1191_s2] sm:$0x3] }
   0xc   :  { %257 = vmatprep.subr.bf16.mxu0 %v858_v7  ;;  %835 = vmatprep.subr.bf16.mxu1 %v858_v7  ;;  %v888_v32 = vld [vmem:[%s1190_s0 + $0x78] sm:$0xff]   ;;  %v1025_v38 = vrot.slane %v63_v36, %v67_v35  ;;  %v1027_v39 = vrot.slane %v63_v36, %v71_v37 }
   0xf   :  { %258 = vmatpush1.bf16.msra.mxu0 %v860_v8  ;;  %843 = vmatpush1.bf16.msra.mxu1 %v860_v8 }
  0x10   :  { %259 = vmatprep.subr.bf16.mxu0 %v861_v9  ;;  %836 = vmatprep.subr.bf16.mxu1 %v861_v9 }
  0x13   :  { %260 = vmatpush1.bf16.msra.mxu0 %v863_v10  ;;  %844 = vmatpush1.bf16.msra.mxu1 %v863_v10 }
  0x14   :  { %261 = vmatprep.subr.bf16.mxu0 %v864_v11  ;;  %837 = vmatprep.subr.bf16.mxu1 %v864_v11 }
  0x17   :  { %262 = vmatpush1.bf16.msra.mxu0 %v866_v12  ;;  %845 = vmatpush1.bf16.msra.mxu1 %v866_v12 }
  0x18   :  { %263 = vmatprep.subr.bf16.mxu0 %v867_v13  ;;  %838 = vmatprep.subr.bf16.mxu1 %v867_v13 }
  0x1b   :  { %264 = vmatpush1.bf16.msra.mxu0 %v869_v14  ;;  %846 = vmatpush1.bf16.msra.mxu1 %v869_v14 }
  0x1c   :  { %265 = vmatprep.subr.bf16.mxu0 %v870_v15  ;;  %839 = vmatprep.subr.bf16.mxu1 %v870_v15 }
  0x1f   :  { %266 = vmatpush1.bf16.msra.mxu0 %v872_v16  ;;  %847 = vmatpush1.bf16.msra.mxu1 %v872_v16 }
  0x22   :  { %284 = vmatmul.mubr.bf16.vlgmr.msra.gmra.mxu0 %v873_v17  ;;  %364 = vmatmul.mubr.bf16.vlgmr.msra.gmra.mxu1 %v874_v18 }
  0x23   :  { %293 = vmatprep.mubr.bf16.mxu0 %v889_v1  ;;  %373 = vmatprep.mubr.bf16.mxu1 %v889_v1 }
  0x2a   :  { %294 = vmatmul.mubr.bf16.gmra.mxu0 %v875_v19  ;;  %374 = vmatmul.mubr.bf16.gmra.mxu1 %v876_v20 }
  0x2b   :  { %303 = vmatprep.mubr.bf16.mxu0 %v889_v1  ;;  %383 = vmatprep.mubr.bf16.mxu1 %v889_v1 }
  0x32   :  { %304 = vmatmul.mubr.bf16.gmra.mxu0 %v877_v21  ;;  %384 = vmatmul.mubr.bf16.gmra.mxu1 %v878_v22 }
  0x33   :  { %313 = vmatprep.mubr.bf16.mxu0 %v889_v1  ;;  %393 = vmatprep.mubr.bf16.mxu1 %v889_v1 }
  0x3a   :  { %314 = vmatmul.mubr.bf16.gmra.mxu0 %v879_v23  ;;  %394 = vmatmul.mubr.bf16.gmra.mxu1 %v880_v24 }
  0x3b   :  { %323 = vmatprep.mubr.bf16.mxu0 %v889_v1  ;;  %403 = vmatprep.mubr.bf16.mxu1 %v889_v1 }
  0x42   :  { %324 = vmatmul.mubr.bf16.gmra.mxu0 %v881_v25  ;;  %404 = vmatmul.mubr.bf16.gmra.mxu1 %v882_v26 }
  0x43   :  { %333 = vmatprep.mubr.bf16.mxu0 %v889_v1  ;;  %413 = vmatprep.mubr.bf16.mxu1 %v889_v1 }
  0x4a   :  { %334 = vmatmul.mubr.bf16.gmra.mxu0 %v883_v27  ;;  %414 = vmatmul.mubr.bf16.gmra.mxu1 %v884_v28 }
  0x4b   :  { %343 = vmatprep.mubr.bf16.mxu0 %v889_v1  ;;  %423 = vmatprep.mubr.bf16.mxu1 %v889_v1 }
  0x52   :  { %344 = vmatmul.mubr.bf16.gmra.mxu0 %v885_v29  ;;  %424 = vmatmul.mubr.bf16.gmra.mxu1 %v886_v30 }
  0x53   :  { %353 = vmatprep.mubr.bf16.mxu0 %v889_v1  ;;  %433 = vmatprep.mubr.bf16.mxu1 %v889_v1 }
  0x5a   :  { %354 = vmatmul.mubr.bf16.gmra.mxu0 %v887_v31  ;;  %434 = vmatmul.mubr.bf16.gmra.mxu1 %v888_v32 }
  0xe2   :  { %v285_v40 = vpop.f32.mrf.mxu0  ;;  %v365_v41 = vpop.f32.mrf.mxu1 }
  0xe3   :  { %v286_v42 = vadd.f32 %v285_v40, %v1025_v38  ;;  %v366_v43 = vadd.f32 %v365_v41, %v1025_v38 }
  0xe4   :  { %v287_v44 = vpop.f32.mrf.mxu0  ;;  %v367_v45 = vpop.f32.mrf.mxu1 }
  0xe5   :  { %v288_v46 = vadd.f32 %v287_v44, %v1027_v39  ;;  %v368_v47 = vadd.f32 %v367_v45, %v1027_v39  ;;  %v444_v50 = vmax.f32 %v286_v42, 0.0  ;;  %v476_v51 = vmax.f32 %v366_v43, 0.0 }
  0xe6   :  { %v289_v48 = vpop.f32.mrf.mxu0  ;;  %v369_v49 = vpop.f32.mrf.mxu1 }
  0xe7   :  { %v445_v52 = vmax.f32 %v288_v46, 0.0  ;;  %v477_v53 = vmax.f32 %v368_v47, 0.0  ;;  %v290_v54 = vadd.f32 %v289_v48, %v1025_v38  ;;  %v370_v55 = vadd.f32 %v369_v49, %v1025_v38 }
  0xe8   :  { %v291_v56 = vpop.f32.mrf.mxu0  ;;  %v371_v57 = vpop.f32.mrf.mxu1 }
  0xe9   :  { %v800_v58 = vpack.c.bf16 %v445_v52, %v444_v50  ;;  %v816_v59 = vpack.c.bf16 %v477_v53, %v476_v51  ;;  %v292_v60 = vadd.f32 %v291_v56, %v1027_v39  ;;  %v372_v61 = vadd.f32 %v371_v57, %v1027_v39 }
  0xea   :  { %v295_v62 = vpop.f32.mrf.mxu0  ;;  %v375_v63 = vpop.f32.mrf.mxu1  ;;  %v446_v2 = vmax.f32 %v290_v54, 0.0  ;;  %v478_v3 = vmax.f32 %v370_v55, 0.0 }
  0xeb   :  { %700 = vst [vmem:[%s1192_s3] sm:$0xff] %v800_v58  ;;  %716 = vst [vmem:[%s1192_s3 + $0x80] sm:$0xff] %v816_v59  ;;  %v296_v0 = vadd.f32 %v295_v62, %v1025_v38  ;;  %v376_v1 = vadd.f32 %v375_v63, %v1025_v38  ;;  %v447_v4 = vmax.f32 %v292_v60, 0.0  ;;  %v479_v5 = vmax.f32 %v372_v61, 0.0 }
  0xec   :  { %v297_v6 = vpop.f32.mrf.mxu0  ;;  %v377_v7 = vpop.f32.mrf.mxu1 }
  0xed   :  { %v298_v8 = vadd.f32 %v297_v6, %v1027_v39  ;;  %v378_v9 = vadd.f32 %v377_v7, %v1027_v39  ;;  %v801_v10 = vpack.c.bf16 %v447_v4, %v446_v2  ;;  %v817_v11 = vpack.c.bf16 %v479_v5, %v478_v3 }
  0xee   :  { %v299_v12 = vpop.f32.mrf.mxu0  ;;  %v379_v13 = vpop.f32.mrf.mxu1  ;;  %v448_v14 = vmax.f32 %v296_v0, 0.0  ;;  %v480_v15 = vmax.f32 %v376_v1, 0.0 }
  0xef   :  { %v449_v16 = vmax.f32 %v298_v8, 0.0  ;;  %v481_v17 = vmax.f32 %v378_v9, 0.0  ;;  %701 = vst [vmem:[%s1192_s3 + $0x8] sm:$0xff] %v801_v10  ;;  %717 = vst [vmem:[%s1192_s3 + $0x88] sm:$0xff] %v817_v11  ;;  %v300_v18 = vadd.f32 %v299_v12, %v1025_v38  ;;  %v380_v19 = vadd.f32 %v379_v13, %v1025_v38 }
  0xf0   :  { %v301_v20 = vpop.f32.mrf.mxu0  ;;  %v381_v21 = vpop.f32.mrf.mxu1 }
  0xf1   :  { %v802_v22 = vpack.c.bf16 %v449_v16, %v448_v14  ;;  %v818_v23 = vpack.c.bf16 %v481_v17, %v480_v15  ;;  %v302_v24 = vadd.f32 %v301_v20, %v1027_v39  ;;  %v382_v25 = vadd.f32 %v381_v21, %v1027_v39 }
  0xf2   :  { %v305_v26 = vpop.f32.mrf.mxu0  ;;  %v385_v27 = vpop.f32.mrf.mxu1  ;;  %v450_v30 = vmax.f32 %v300_v18, 0.0  ;;  %v482_v31 = vmax.f32 %v380_v19, 0.0 }
  0xf3   :  { %702 = vst [vmem:[%s1192_s3 + $0x10] sm:$0xff] %v802_v22  ;;  %718 = vst [vmem:[%s1192_s3 + $0x90] sm:$0xff] %v818_v23  ;;  %v306_v28 = vadd.f32 %v305_v26, %v1025_v38  ;;  %v386_v29 = vadd.f32 %v385_v27, %v1025_v38  ;;  %v451_v32 = vmax.f32 %v302_v24, 0.0  ;;  %v483_v33 = vmax.f32 %v382_v25, 0.0 }
  0xf4   :  { %v307_v34 = vpop.f32.mrf.mxu0  ;;  %v387_v35 = vpop.f32.mrf.mxu1 }
  0xf5   :  { %v308_v36 = vadd.f32 %v307_v34, %v1027_v39  ;;  %v388_v37 = vadd.f32 %v387_v35, %v1027_v39  ;;  %v803_v40 = vpack.c.bf16 %v451_v32, %v450_v30  ;;  %v819_v41 = vpack.c.bf16 %v483_v33, %v482_v31 }
  0xf6   :  { %v309_v42 = vpop.f32.mrf.mxu0  ;;  %v389_v43 = vpop.f32.mrf.mxu1  ;;  %v452_v44 = vmax.f32 %v306_v28, 0.0  ;;  %v484_v45 = vmax.f32 %v386_v29, 0.0 }
  0xf7   :  { %v453_v46 = vmax.f32 %v308_v36, 0.0  ;;  %v485_v47 = vmax.f32 %v388_v37, 0.0  ;;  %703 = vst [vmem:[%s1192_s3 + $0x18] sm:$0xff] %v803_v40  ;;  %719 = vst [vmem:[%s1192_s3 + $0x98] sm:$0xff] %v819_v41  ;;  %v310_v48 = vadd.f32 %v309_v42, %v1025_v38  ;;  %v390_v49 = vadd.f32 %v389_v43, %v1025_v38 }
  0xf8   :  { %v311_v50 = vpop.f32.mrf.mxu0  ;;  %v391_v51 = vpop.f32.mrf.mxu1 }
  0xf9   :  { %v804_v52 = vpack.c.bf16 %v453_v46, %v452_v44  ;;  %v820_v53 = vpack.c.bf16 %v485_v47, %v484_v45  ;;  %v312_v54 = vadd.f32 %v311_v50, %v1027_v39  ;;  %v392_v55 = vadd.f32 %v391_v51, %v1027_v39 }
  0xfa   :  { %v315_v56 = vpop.f32.mrf.mxu0  ;;  %v395_v57 = vpop.f32.mrf.mxu1  ;;  %v454_v60 = vmax.f32 %v310_v48, 0.0  ;;  %v486_v61 = vmax.f32 %v390_v49, 0.0 }
  0xfb   :  { %704 = vst [vmem:[%s1192_s3 + $0x20] sm:$0xff] %v804_v52  ;;  %720 = vst [vmem:[%s1192_s3 + $0xa0] sm:$0xff] %v820_v53  ;;  %v316_v58 = vadd.f32 %v315_v56, %v1025_v38  ;;  %v396_v59 = vadd.f32 %v395_v57, %v1025_v38  ;;  %v455_v62 = vmax.f32 %v312_v54, 0.0  ;;  %v487_v63 = vmax.f32 %v392_v55, 0.0 }
  0xfc   :  { %v317_v0 = vpop.f32.mrf.mxu0  ;;  %v397_v1 = vpop.f32.mrf.mxu1 }
  0xfd   :  { %v318_v2 = vadd.f32 %v317_v0, %v1027_v39  ;;  %v398_v3 = vadd.f32 %v397_v1, %v1027_v39  ;;  %v805_v4 = vpack.c.bf16 %v455_v62, %v454_v60  ;;  %v821_v5 = vpack.c.bf16 %v487_v63, %v486_v61 }
  0xfe   :  { %v319_v6 = vpop.f32.mrf.mxu0  ;;  %v399_v7 = vpop.f32.mrf.mxu1  ;;  %v456_v8 = vmax.f32 %v316_v58, 0.0  ;;  %v488_v9 = vmax.f32 %v396_v59, 0.0 }
  0xff   :  { %v457_v10 = vmax.f32 %v318_v2, 0.0  ;;  %v489_v11 = vmax.f32 %v398_v3, 0.0  ;;  %705 = vst [vmem:[%s1192_s3 + $0x28] sm:$0xff] %v805_v4  ;;  %721 = vst [vmem:[%s1192_s3 + $0xa8] sm:$0xff] %v821_v5  ;;  %v320_v12 = vadd.f32 %v319_v6, %v1025_v38  ;;  %v400_v13 = vadd.f32 %v399_v7, %v1025_v38 }
 0x100   :  { %v321_v14 = vpop.f32.mrf.mxu0  ;;  %v401_v15 = vpop.f32.mrf.mxu1 }
 0x101   :  { %v806_v16 = vpack.c.bf16 %v457_v10, %v456_v8  ;;  %v822_v17 = vpack.c.bf16 %v489_v11, %v488_v9  ;;  %v322_v18 = vadd.f32 %v321_v14, %v1027_v39  ;;  %v402_v19 = vadd.f32 %v401_v15, %v1027_v39 }
 0x102   :  { %v325_v20 = vpop.f32.mrf.mxu0  ;;  %v405_v21 = vpop.f32.mrf.mxu1  ;;  %v458_v24 = vmax.f32 %v320_v12, 0.0  ;;  %v490_v25 = vmax.f32 %v400_v13, 0.0 }
 0x103   :  { %706 = vst [vmem:[%s1192_s3 + $0x30] sm:$0xff] %v806_v16  ;;  %722 = vst [vmem:[%s1192_s3 + $0xb0] sm:$0xff] %v822_v17  ;;  %v326_v22 = vadd.f32 %v325_v20, %v1025_v38  ;;  %v406_v23 = vadd.f32 %v405_v21, %v1025_v38  ;;  %v459_v26 = vmax.f32 %v322_v18, 0.0  ;;  %v491_v27 = vmax.f32 %v402_v19, 0.0 }
 0x104   :  { %v327_v28 = vpop.f32.mrf.mxu0  ;;  %v407_v29 = vpop.f32.mrf.mxu1 }
 0x105   :  { %v328_v30 = vadd.f32 %v327_v28, %v1027_v39  ;;  %v408_v31 = vadd.f32 %v407_v29, %v1027_v39  ;;  %v807_v32 = vpack.c.bf16 %v459_v26, %v458_v24  ;;  %v823_v33 = vpack.c.bf16 %v491_v27, %v490_v25 }
 0x106   :  { %v329_v34 = vpop.f32.mrf.mxu0  ;;  %v409_v35 = vpop.f32.mrf.mxu1  ;;  %v460_v36 = vmax.f32 %v326_v22, 0.0  ;;  %v492_v37 = vmax.f32 %v406_v23, 0.0 }
 0x107   :  { %v461_v40 = vmax.f32 %v328_v30, 0.0  ;;  %v493_v41 = vmax.f32 %v408_v31, 0.0  ;;  %707 = vst [vmem:[%s1192_s3 + $0x38] sm:$0xff] %v807_v32  ;;  %723 = vst [vmem:[%s1192_s3 + $0xb8] sm:$0xff] %v823_v33  ;;  %v330_v42 = vadd.f32 %v329_v34, %v1025_v38  ;;  %v410_v43 = vadd.f32 %v409_v35, %v1025_v38 }
 0x108   :  { %v331_v44 = vpop.f32.mrf.mxu0  ;;  %v411_v45 = vpop.f32.mrf.mxu1 }
 0x109   :  { %v808_v46 = vpack.c.bf16 %v461_v40, %v460_v36  ;;  %v824_v47 = vpack.c.bf16 %v493_v41, %v492_v37  ;;  %v332_v48 = vadd.f32 %v331_v44, %v1027_v39  ;;  %v412_v49 = vadd.f32 %v411_v45, %v1027_v39 }
 0x10a   :  { %v335_v50 = vpop.f32.mrf.mxu0  ;;  %v415_v51 = vpop.f32.mrf.mxu1  ;;  %v462_v54 = vmax.f32 %v330_v42, 0.0  ;;  %v494_v55 = vmax.f32 %v410_v43, 0.0 }
 0x10b   :  { %708 = vst [vmem:[%s1192_s3 + $0x40] sm:$0xff] %v808_v46  ;;  %724 = vst [vmem:[%s1192_s3 + $0xc0] sm:$0xff] %v824_v47  ;;  %v336_v52 = vadd.f32 %v335_v50, %v1025_v38  ;;  %v416_v53 = vadd.f32 %v415_v51, %v1025_v38  ;;  %v463_v56 = vmax.f32 %v332_v48, 0.0  ;;  %v495_v57 = vmax.f32 %v412_v49, 0.0 }
 0x10c   :  { %v337_v58 = vpop.f32.mrf.mxu0  ;;  %v417_v59 = vpop.f32.mrf.mxu1 }
 0x10d   :  { %v338_v60 = vadd.f32 %v337_v58, %v1027_v39  ;;  %v418_v61 = vadd.f32 %v417_v59, %v1027_v39  ;;  %v809_v62 = vpack.c.bf16 %v463_v56, %v462_v54  ;;  %v825_v63 = vpack.c.bf16 %v495_v57, %v494_v55 }
 0x10e   :  { %v339_v0 = vpop.f32.mrf.mxu0  ;;  %v419_v1 = vpop.f32.mrf.mxu1  ;;  %v464_v2 = vmax.f32 %v336_v52, 0.0  ;;  %v496_v3 = vmax.f32 %v416_v53, 0.0 }
 0x10f   :  { %v465_v4 = vmax.f32 %v338_v60, 0.0  ;;  %v497_v5 = vmax.f32 %v418_v61, 0.0  ;;  %709 = vst [vmem:[%s1192_s3 + $0x48] sm:$0xff] %v809_v62  ;;  %725 = vst [vmem:[%s1192_s3 + $0xc8] sm:$0xff] %v825_v63  ;;  %v340_v6 = vadd.f32 %v339_v0, %v1025_v38  ;;  %v420_v7 = vadd.f32 %v419_v1, %v1025_v38 }
 0x110   :  { %v341_v8 = vpop.f32.mrf.mxu0  ;;  %v421_v9 = vpop.f32.mrf.mxu1 }
 0x111   :  { %v810_v10 = vpack.c.bf16 %v465_v4, %v464_v2  ;;  %v826_v11 = vpack.c.bf16 %v497_v5, %v496_v3  ;;  %v342_v12 = vadd.f32 %v341_v8, %v1027_v39  ;;  %v422_v13 = vadd.f32 %v421_v9, %v1027_v39 }
 0x112   :  { %v345_v14 = vpop.f32.mrf.mxu0  ;;  %v425_v15 = vpop.f32.mrf.mxu1  ;;  %v466_v18 = vmax.f32 %v340_v6, 0.0  ;;  %v498_v19 = vmax.f32 %v420_v7, 0.0 }
 0x113   :  { %710 = vst [vmem:[%s1192_s3 + $0x50] sm:$0xff] %v810_v10  ;;  %726 = vst [vmem:[%s1192_s3 + $0xd0] sm:$0xff] %v826_v11  ;;  %v346_v16 = vadd.f32 %v345_v14, %v1025_v38  ;;  %v426_v17 = vadd.f32 %v425_v15, %v1025_v38  ;;  %v467_v20 = vmax.f32 %v342_v12, 0.0  ;;  %v499_v21 = vmax.f32 %v422_v13, 0.0 }
 0x114   :  { %v347_v22 = vpop.f32.mrf.mxu0  ;;  %v427_v23 = vpop.f32.mrf.mxu1 }
 0x115   :  { %v348_v24 = vadd.f32 %v347_v22, %v1027_v39  ;;  %v428_v25 = vadd.f32 %v427_v23, %v1027_v39  ;;  %v811_v26 = vpack.c.bf16 %v467_v20, %v466_v18  ;;  %v827_v27 = vpack.c.bf16 %v499_v21, %v498_v19 }
 0x116   :  { %v349_v28 = vpop.f32.mrf.mxu0  ;;  %v429_v29 = vpop.f32.mrf.mxu1  ;;  %v468_v30 = vmax.f32 %v346_v16, 0.0  ;;  %v500_v31 = vmax.f32 %v426_v17, 0.0 }
 0x117   :  { %v469_v32 = vmax.f32 %v348_v24, 0.0  ;;  %v501_v33 = vmax.f32 %v428_v25, 0.0  ;;  %711 = vst [vmem:[%s1192_s3 + $0x58] sm:$0xff] %v811_v26  ;;  %727 = vst [vmem:[%s1192_s3 + $0xd8] sm:$0xff] %v827_v27  ;;  %v350_v34 = vadd.f32 %v349_v28, %v1025_v38  ;;  %v430_v35 = vadd.f32 %v429_v29, %v1025_v38 }
 0x118   :  { %v351_v36 = vpop.f32.mrf.mxu0  ;;  %v431_v37 = vpop.f32.mrf.mxu1 }
 0x119   :  { %v812_v40 = vpack.c.bf16 %v469_v32, %v468_v30  ;;  %v828_v41 = vpack.c.bf16 %v501_v33, %v500_v31  ;;  %v352_v42 = vadd.f32 %v351_v36, %v1027_v39  ;;  %v432_v43 = vadd.f32 %v431_v37, %v1027_v39 }
 0x11a   :  { %v355_v44 = vpop.f32.mrf.mxu0  ;;  %v435_v45 = vpop.f32.mrf.mxu1  ;;  %v470_v48 = vmax.f32 %v350_v34, 0.0  ;;  %v502_v49 = vmax.f32 %v430_v35, 0.0 }
 0x11b   :  { %712 = vst [vmem:[%s1192_s3 + $0x60] sm:$0xff] %v812_v40  ;;  %728 = vst [vmem:[%s1192_s3 + $0xe0] sm:$0xff] %v828_v41  ;;  %v356_v46 = vadd.f32 %v355_v44, %v1025_v38  ;;  %v436_v47 = vadd.f32 %v435_v45, %v1025_v38  ;;  %v471_v50 = vmax.f32 %v352_v42, 0.0  ;;  %v503_v51 = vmax.f32 %v432_v43, 0.0 }
 0x11c   :  { %v357_v52 = vpop.f32.mrf.mxu0  ;;  %v437_v53 = vpop.f32.mrf.mxu1 }
 0x11d   :  { %v358_v54 = vadd.f32 %v357_v52, %v1027_v39  ;;  %v438_v55 = vadd.f32 %v437_v53, %v1027_v39  ;;  %v813_v56 = vpack.c.bf16 %v471_v50, %v470_v48  ;;  %v829_v57 = vpack.c.bf16 %v503_v51, %v502_v49 }
 0x11e   :  { %v359_v58 = vpop.f32.mrf.mxu0  ;;  %v439_v59 = vpop.f32.mrf.mxu1  ;;  %v472_v60 = vmax.f32 %v356_v46, 0.0  ;;  %v504_v61 = vmax.f32 %v436_v47, 0.0 }
 0x11f   :  { %v473_v62 = vmax.f32 %v358_v54, 0.0  ;;  %v505_v63 = vmax.f32 %v438_v55, 0.0  ;;  %713 = vst [vmem:[%s1192_s3 + $0x68] sm:$0xff] %v813_v56  ;;  %729 = vst [vmem:[%s1192_s3 + $0xe8] sm:$0xff] %v829_v57  ;;  %v360_v0 = vadd.f32 %v359_v58, %v1025_v38  ;;  %v440_v1 = vadd.f32 %v439_v59, %v1025_v38 }
 0x120   :  { %v361_v2 = vpop.f32.mrf.mxu0  ;;  %v441_v3 = vpop.f32.mrf.mxu1 }
 0x121   :  { %v814_v4 = vpack.c.bf16 %v473_v62, %v472_v60  ;;  %v830_v5 = vpack.c.bf16 %v505_v63, %v504_v61  ;;  %v362_v6 = vadd.f32 %v361_v2, %v1027_v39  ;;  %v442_v7 = vadd.f32 %v441_v3, %v1027_v39 }
 0x122   :  { %v474_v8 = vmax.f32 %v360_v0, 0.0  ;;  %v506_v9 = vmax.f32 %v440_v1, 0.0 }
 0x123   :  { %714 = vst [vmem:[%s1192_s3 + $0x70] sm:$0xff] %v814_v4  ;;  %730 = vst [vmem:[%s1192_s3 + $0xf0] sm:$0xff] %v830_v5  ;;  %v475_v10 = vmax.f32 %v362_v6, 0.0  ;;  %v507_v38 = vmax.f32 %v442_v7, 0.0 }
 0x125   :  { %v815_v11 = vpack.c.bf16 %v475_v10, %v474_v8  ;;  %v831_v12 = vpack.c.bf16 %v507_v38, %v506_v9 }
 0x127   :  { %715 = vst [vmem:[%s1192_s3 + $0x78] sm:$0xff] %v815_v11  ;;  %731 = vst [vmem:[%s1192_s3 + $0xf8] sm:$0xff] %v831_v12 }

</bundles_post_ra>
